<compile_context>
chip_gen: v5e
topology: v5e:2x2
jax: 0.10.0
libtpu: 0.0.40
codegen_flags: <defaults>
</compile_context>

<pallas_src>
import numpy as np
import jax
import jax.numpy as jnp
from jax.experimental import pallas as pl
from jax.experimental.pallas import tpu as pltpu


def _round_up(a, b):
    return (a + b - 1) // b * b


# ----------------------------------------------------------------------------
# Pallas kernel: in-kernel embedding gather + multi-layer LSTM, last step out.
# ----------------------------------------------------------------------------
def _lstm_cell(gates, c_prev, D):
    # PyTorch gate order i, f, g, o.  All gate math / state in f32.
    i_g = jax.nn.sigmoid(gates[:, 0 * D:1 * D])
    f_g = jax.nn.sigmoid(gates[:, 1 * D:2 * D])
    g_g = jnp.tanh(gates[:, 2 * D:3 * D])
    o_g = jax.nn.sigmoid(gates[:, 3 * D:4 * D])
    c = f_g * c_prev + i_g * g_g
    h = o_g * jnp.tanh(c)
    return h, c


def tree_lstm_kernel(parents_ref, x_ref, emb_ref, w_ref, b_ref, out_ref):
    TB, D = x_ref.shape                      # batch tile, emb dim
    V = emb_ref.shape[0]                     # vocab (len(tree))
    P = parents_ref.shape[1]                 # ancestors per leaf
    T = P + 1                                # LSTM sequence length
    L, _, G = w_ref.shape                    # layers, 2D, 4D
    cdt = w_ref.dtype                        # compute (MXU operand) dtype, e.g. bf16
    f32 = jnp.float32

    # --- in-kernel embedding gather (emb table is VMEM-resident) -------------
    emb = emb_ref[...]                       # (V, D) bf16
    ids = parents_ref[...]                   # (TB, P) int32
    xs = []
    for p in range(P):                       # P is tiny & static -> unrolled
        idp = ids[:, p:p + 1]                # (TB, 1)
        onehot = (idp == jax.lax.broadcasted_iota(jnp.int32, (TB, V), 1)
                  ).astype(cdt)              # (TB, V)
        # Exact row select via MXU; padding_idx=0 handled by the zero row.
        xs.append(jnp.dot(onehot, emb, preferred_element_type=f32))  # (TB, D) f32
    xs.append(x_ref[...].astype(f32))        # last time step: the input embedding

    # --- hoisted layer-0 input projection (one tall matmul, bias folded) -----
    w0 = w_ref[0]                            # (2D, G)
    w_ih0 = w0[:D, :]                        # (D, G)
    w_hh0 = w0[D:, :]                        # (D, G)
    xcat = jnp.concatenate(xs, axis=0).astype(cdt)                    # (T*TB, D)
    xproj = jnp.dot(xcat, w_ih0, preferred_element_type=f32) + b_ref[0]  # (T*TB, G)

    # --- hoist weight / bias loads & broadcasts out of the T x L loops -------
    w_layers = [None] * L
    b_hoist = [None] * L
    for l in range(1, L):
        w_layers[l] = w_ref[l]                                   # (2D, G) bf16
        b_hoist[l] = jnp.broadcast_to(b_ref[l], (TB, G))         # (TB, G) f32

    # --- recurrence (T, L small & static -> fully unrolled) ------------------
    h = [jnp.zeros((TB, D), f32) for _ in range(L)]
    c = [jnp.zeros((TB, D), f32) for _ in range(L)]
    for t in range(T):
        # layer 0: hoisted input projection + recurrent dot only
        gates = (xproj[t * TB:(t + 1) * TB, :]
                 + jnp.dot(h[0].astype(cdt), w_hh0, preferred_element_type=f32))
        h[0], c[0] = _lstm_cell(gates, c[0], D)
        # layers >= 1: fused concat([x_t, h]) @ [W_ih^T; W_hh^T]
        for l in range(1, L):
            xh = jnp.concatenate([h[l - 1], h[l]], axis=-1).astype(cdt)  # (TB, 2D)
            gates = (jnp.dot(xh, w_layers[l], preferred_element_type=f32)
                     + b_hoist[l])
            h[l], c[l] = _lstm_cell(gates, c[l], D)

    # outputs[:, -1, :] == top-layer hidden at the last time step.
    out_ref[...] = h[L - 1].astype(out_ref.dtype)


# ----------------------------------------------------------------------------
# Wrapper: id gather (int32 only) + padded, tiled pallas_call over the batch.
# ----------------------------------------------------------------------------
def tree_weighted_embedding(input_src, input_embeddings, parent_table, emb_table,
                            w_ih, w_hh, b_ih, b_hh, *, tile_b=256,
                            compute_dtype=jnp.bfloat16):
    """input_src: (B,S) int32, input_embeddings: (B,S,D),
    parent_table: (V,P) int32, emb_table: (V,D),
    w_ih/w_hh: (L,4D,D), b_ih/b_hh: (L,4D)."""
    B, S, D = input_embeddings.shape
    N = B * S
    L, G, _ = w_ih.shape                     # G = 4*D
    V = emb_table.shape[0]
    P = parent_table.shape[1]

    # --- cheap int32 glue only: ancestor-id lookup (no (N,T,D) HBM round-trip)
    ids = input_src.reshape(N)
    parents = parent_table[ids]              # (N, P) int32
    x_flat = input_embeddings.reshape(N, D)  # streamed in its original dtype

    # --- pad N up to a tile multiple instead of asserting --------------------
    tile_b = max(8, min(int(tile_b), _round_up(N, 8)))
    Np = _round_up(N, tile_b)
    if Np != N:
        parents = jnp.pad(parents, ((0, Np - N), (0, 0)))
        x_flat = jnp.pad(x_flat, ((0, Np - N), (0, 0)))
    grid = (Np // tile_b,)

    # --- weights: pre-transpose, fuse [W_ih; W_hh], cast MXU operands to bf16
    w_cat = jnp.concatenate(
        [jnp.transpose(w_ih, (0, 2, 1)), jnp.transpose(w_hh, (0, 2, 1))],
        axis=1).astype(compute_dtype)                       # (L, 2D, 4D)
    b = (b_ih + b_hh).astype(jnp.float32).reshape(L, 1, G)  # folded bias, f32
    emb_c = emb_table.astype(compute_dtype)                 # (V, D) resident

    # --- VMEM budget derived from the actual block sizes (not hardcoded) -----
    csize = jnp.dtype(compute_dtype).itemsize
    stream_bytes = 2 * tile_b * (P * 4 + D * x_flat.dtype.itemsize
                                 + D * input_embeddings.dtype.itemsize)
    resident_bytes = 2 * ((V * D + L * 2 * D * G) * csize + L * G * 4)
    vmem_limit = int(min(64 * 1024 * 1024,
                         max(16 * 1024 * 1024, 4 * (stream_bytes + resident_bytes))))

    out = pl.pallas_call(
        tree_lstm_kernel,
        out_shape=jax.ShapeDtypeStruct((Np, D), input_embeddings.dtype),
        grid_spec=pltpu.PrefetchScalarGridSpec(
            num_scalar_prefetch=0,
            grid=grid,
            in_specs=[
                # streamed per batch tile (software-pipelined)
                pl.BlockSpec((tile_b, P), lambda i: (i, 0)),      # parent ids
                pl.BlockSpec((tile_b, D), lambda i: (i, 0)),      # input embeddings
                # VMEM-resident (constant index_map -> DMA'd once)
                pl.BlockSpec((V, D), lambda i: (0, 0)),           # embedding table
                pl.BlockSpec((L, 2 * D, G), lambda i: (0, 0, 0)),  # fused LSTM weights
                pl.BlockSpec((L, 1, G), lambda i: (0, 0, 0)),     # folded biases
            ],
            out_specs=pl.BlockSpec((tile_b, D), lambda i: (i, 0)),
        ),
        compiler_params=pltpu.CompilerParams(
            dimension_semantics=("parallel",),   # split batch grid across TCs (v7x)
            vmem_limit_bytes=vmem_limit,
        ),
    )(parents, x_flat, emb_c, w_cat, b)

    return out[:N].reshape(B, S, D)


# ----------------------------------------------------------------------------
# Host-side stand-in for TreeVocabulary.getLeafAns: binary-tree ancestry.
# ----------------------------------------------------------------------------
def build_parent_table(vocab_size, num_parents):
    table = np.zeros((vocab_size, num_parents), dtype=np.int32)
    for i in range(vocab_size):
        a = i
        for p in range(num_parents):
            a = a // 2                       # ancestor; 0 == padding_idx (zero emb)
            table[i, p] = a
    return jnp.asarray(table)


# ----------------------------------------------------------------------------
# Pure-JAX reference mirroring the PyTorch forward (and the kernel's standard
# bf16-operand / f32-accumulate precision policy) for validation.
# ----------------------------------------------------------------------------
def _reference(input_src, input_embeddings, parent_table, emb_table,
               w_ih, w_hh, b_ih, b_hh, compute_dtype=jnp.bfloat16):
    B, S, D = input_embeddings.shape
    N = B * S
    L = w_ih.shape[0]
    f32 = jnp.float32

    emb_c = emb_table.astype(compute_dtype)
    ids = input_src.reshape(N)
    parents = parent_table[ids]
    parent_emb = emb_c[parents].astype(f32)
    seq = jnp.concatenate([parent_emb, input_embeddings.reshape(N, 1, D)], axis=1)
    T = seq.shape[1]

    w_ih_c = w_ih.astype(compute_dtype)
    w_hh_c = w_hh.astype(compute_dtype)
    b = (b_ih + b_hh).astype(f32)

    layer_in = seq
    for l in range(L):
        h = jnp.zeros((N, D), f32)
        c = jnp.zeros((N, D), f32)
        outs = []
        for t in range(T):
            x_t = layer_in[:, t, :].astype(compute_dtype)
            gates = (jnp.dot(x_t, w_ih_c[l].T, preferred_element_type=f32)
                     + jnp.dot(h.astype(compute_dtype), w_hh_c[l].T,
                               preferred_element_type=f32)
                     + b[l])
            i_g = jax.nn.sigmoid(gates[:, 0 * D:1 * D])
            f_g = jax.nn.sigmoid(gates[:, 1 * D:2 * D])
            g_g = jnp.tanh(gates[:, 2 * D:3 * D])
            o_g = jax.nn.sigmoid(gates[:, 3 * D:4 * D])
            c = f_g * c + i_g * g_g
            h = o_g * jnp.tanh(c)
            outs.append(h)
        layer_in = jnp.stack(outs, axis=1)
    return layer_in[:, -1, :].reshape(B, S, D)


if __name__ == "__main__":
    B, S, D = 2, 8, 32          # batch, seq, emb_dim
    vocab = 64                  # len(tree)
    num_parents = 3             # ancestors per leaf -> LSTM sequence length 4
    num_layers = 2

    key = jax.random.PRNGKey(0)
    k_src, k_emb, k_x, k_wi, k_wh, k_bi, k_bh = jax.random.split(key, 7)

    input_src = jax.random.randint(k_src, (B, S), 1, vocab, dtype=jnp.int32)
    input_embeddings = jax.random.normal(k_x, (B, S, D), dtype=jnp.float32)

    parent_table = build_parent_table(vocab, num_parents)
    # nn.Embedding(padding_idx=0): row 0 forced to zero.
    emb_table = (0.1 * jax.random.normal(k_emb, (vocab, D), dtype=jnp.float32)
                 ).at[0].set(0.0)

    # nn.LSTM default init: U(-1/sqrt(hidden), 1/sqrt(hidden)).
    bound = 1.0 / (D ** 0.5)
    w_ih = jax.random.uniform(k_wi, (num_layers, 4 * D, D), jnp.float32,
                              minval=-bound, maxval=bound)
    w_hh = jax.random.uniform(k_wh, (num_layers, 4 * D, D), jnp.float32,
                              minval=-bound, maxval=bound)
    b_ih = jax.random.uniform(k_bi, (num_layers, 4 * D), jnp.float32,
                              minval=-bound, maxval=bound)
    b_hh = jax.random.uniform(k_bh, (num_layers, 4 * D), jnp.float32,
                              minval=-bound, maxval=bound)

    out = tree_weighted_embedding(input_src, input_embeddings, parent_table,
                                  emb_table, w_ih, w_hh, b_ih, b_hh)
    jax.block_until_ready(out)

    out_ref = _reference(input_src, input_embeddings, parent_table, emb_table,
                         w_ih, w_hh, b_ih, b_hh)
    assert out.shape == (B, S, D)
    assert jnp.allclose(out, out_ref, atol=2e-3, rtol=2e-3), (
        float(jnp.max(jnp.abs(out - out_ref))))

    print("KERNEL_OK")
</pallas_src>

<mosaic_0001>
module attributes {stable_mosaic.version = 11 : i64} {
  func.func @tree_lstm_kernel(%arg0: i32, %arg1: memref<16x3xi32, #tpu.memory_space<vmem>>, %arg2: memref<16x32xf32, #tpu.memory_space<vmem>>, %arg3: memref<64x32xbf16, #tpu.memory_space<vmem>>, %arg4: memref<2x64x128xbf16, #tpu.memory_space<vmem>>, %arg5: memref<2x1x128xf32, #tpu.memory_space<vmem>>, %arg6: memref<16x32xf32, #tpu.memory_space<vmem>>) attributes {dimension_semantics = [#tpu.dimension_semantics<parallel>], iteration_bounds = array<i64: 1>, scalar_prefetch = 0 : i64, scratch_operands = 0 : i64, tpu.core_type = #tpu.core_type<tc>, window_params = [{transform_indices = @transform_0, window_bounds = array<i64: 16, 3>}, {transform_indices = @transform_1, window_bounds = array<i64: 16, 32>}, {pipeline_mode = #tpu.pipeline_mode<synchronous>, transform_indices = @transform_2, window_bounds = array<i64: 64, 32>}, {pipeline_mode = #tpu.pipeline_mode<synchronous>, transform_indices = @transform_3, window_bounds = array<i64: 2, 64, 128>}, {pipeline_mode = #tpu.pipeline_mode<synchronous>, transform_indices = @transform_4, window_bounds = array<i64: 2, 1, 128>}, {transform_indices = @transform_5, window_bounds = array<i64: 16, 32>}]} {
    %c0 = arith.constant 0 : index
    %c0_0 = arith.constant 0 : index
    %0 = vector.load %arg3[%c0, %c0_0] : memref<64x32xbf16, #tpu.memory_space<vmem>>, vector<64x32xbf16>
    %c0_1 = arith.constant 0 : index
    %c0_2 = arith.constant 0 : index
    %1 = vector.load %arg1[%c0_1, %c0_2] : memref<16x3xi32, #tpu.memory_space<vmem>>, vector<16x3xi32>
    %2 = vector.extract_strided_slice %1 {offsets = [0, 0], sizes = [16, 1], strides = [1, 1]} : vector<16x3xi32> to vector<16x1xi32>
    %3 = tpu.iota {dimensions = array<i32: 1>} : vector<16x64xi32>
    %4 = vector.broadcast %2 : vector<16x1xi32> to vector<16x64xi32>
    %5 = arith.cmpi eq, %4, %3 : vector<16x64xi32>
    %6 = arith.extui %5 : vector<16x64xi1> to vector<16x64xi32>
    %7 = arith.sitofp %6 : vector<16x64xi32> to vector<16x64xf32>
    %8 = arith.truncf %7 : vector<16x64xf32> to vector<16x64xbf16>
    %cst = arith.constant dense<0.000000e+00> : vector<16x32xf32>
    %9 = tpu.matmul %8, %0, %cst {dimension_numbers = #tpu.dot_dimension_numbers<[1], [0], [0], [1], [0, 0, 1, 1], [], []>} : vector<16x64xbf16>, vector<64x32xbf16>, vector<16x32xf32> -> vector<16x32xf32>
    %10 = vector.extract_strided_slice %1 {offsets = [0, 1], sizes = [16, 1], strides = [1, 1]} : vector<16x3xi32> to vector<16x1xi32>
    %11 = tpu.iota {dimensions = array<i32: 1>} : vector<16x64xi32>
    %12 = vector.broadcast %10 : vector<16x1xi32> to vector<16x64xi32>
    %13 = arith.cmpi eq, %12, %11 : vector<16x64xi32>
    %14 = arith.extui %13 : vector<16x64xi1> to vector<16x64xi32>
    %15 = arith.sitofp %14 : vector<16x64xi32> to vector<16x64xf32>
    %16 = arith.truncf %15 : vector<16x64xf32> to vector<16x64xbf16>
    %cst_3 = arith.constant dense<0.000000e+00> : vector<16x32xf32>
    %17 = tpu.matmul %16, %0, %cst_3 {dimension_numbers = #tpu.dot_dimension_numbers<[1], [0], [0], [1], [0, 0, 1, 1], [], []>} : vector<16x64xbf16>, vector<64x32xbf16>, vector<16x32xf32> -> vector<16x32xf32>
    %18 = vector.extract_strided_slice %1 {offsets = [0, 2], sizes = [16, 1], strides = [1, 1]} : vector<16x3xi32> to vector<16x1xi32>
    %19 = tpu.iota {dimensions = array<i32: 1>} : vector<16x64xi32>
    %20 = vector.broadcast %18 : vector<16x1xi32> to vector<16x64xi32>
    %21 = arith.cmpi eq, %20, %19 : vector<16x64xi32>
    %22 = arith.extui %21 : vector<16x64xi1> to vector<16x64xi32>
    %23 = arith.sitofp %22 : vector<16x64xi32> to vector<16x64xf32>
    %24 = arith.truncf %23 : vector<16x64xf32> to vector<16x64xbf16>
    %cst_4 = arith.constant dense<0.000000e+00> : vector<16x32xf32>
    %25 = tpu.matmul %24, %0, %cst_4 {dimension_numbers = #tpu.dot_dimension_numbers<[1], [0], [0], [1], [0, 0, 1, 1], [], []>} : vector<16x64xbf16>, vector<64x32xbf16>, vector<16x32xf32> -> vector<16x32xf32>
    %c0_5 = arith.constant 0 : index
    %c0_6 = arith.constant 0 : index
    %26 = vector.load %arg2[%c0_5, %c0_6] : memref<16x32xf32, #tpu.memory_space<vmem>>, vector<16x32xf32>
    %c0_7 = arith.constant 0 : index
    %c0_8 = arith.constant 0 : index
    %c0_9 = arith.constant 0 : index
    %27 = vector.load %arg4[%c0_7, %c0_8, %c0_9] : memref<2x64x128xbf16, #tpu.memory_space<vmem>>, vector<1x64x128xbf16>
    %28 = vector.shape_cast %27 : vector<1x64x128xbf16> to vector<64x128xbf16>
    %29 = vector.extract_strided_slice %28 {offsets = [0, 0], sizes = [32, 128], strides = [1, 1]} : vector<64x128xbf16> to vector<32x128xbf16>
    %30 = vector.extract_strided_slice %28 {offsets = [32, 0], sizes = [32, 128], strides = [1, 1]} : vector<64x128xbf16> to vector<32x128xbf16>
    %31 = tpu.concatenate %9, %17, %25, %26 in 0 : vector<16x32xf32>, vector<16x32xf32>, vector<16x32xf32>, vector<16x32xf32> -> vector<64x32xf32>
    %32 = arith.truncf %31 : vector<64x32xf32> to vector<64x32xbf16>
    %cst_10 = arith.constant dense<0.000000e+00> : vector<64x128xf32>
    %33 = tpu.matmul %32, %29, %cst_10 {dimension_numbers = #tpu.dot_dimension_numbers<[1], [0], [0], [1], [0, 0, 1, 1], [], []>} : vector<64x32xbf16>, vector<32x128xbf16>, vector<64x128xf32> -> vector<64x128xf32>
    %c0_11 = arith.constant 0 : index
    %c0_12 = arith.constant 0 : index
    %c0_13 = arith.constant 0 : index
    %34 = vector.load %arg5[%c0_11, %c0_12, %c0_13] : memref<2x1x128xf32, #tpu.memory_space<vmem>>, vector<1x1x128xf32>
    %35 = vector.shape_cast %34 : vector<1x1x128xf32> to vector<1x128xf32>
    %36 = vector.broadcast %35 : vector<1x128xf32> to vector<64x128xf32>
    %37 = arith.addf %33, %36 : vector<64x128xf32>
    %c1 = arith.constant 1 : index
    %c0_14 = arith.constant 0 : index
    %c0_15 = arith.constant 0 : index
    %38 = vector.load %arg4[%c1, %c0_14, %c0_15] : memref<2x64x128xbf16, #tpu.memory_space<vmem>>, vector<1x64x128xbf16>
    %39 = vector.shape_cast %38 : vector<1x64x128xbf16> to vector<64x128xbf16>
    %c1_16 = arith.constant 1 : index
    %c0_17 = arith.constant 0 : index
    %c0_18 = arith.constant 0 : index
    %40 = vector.load %arg5[%c1_16, %c0_17, %c0_18] : memref<2x1x128xf32, #tpu.memory_space<vmem>>, vector<1x1x128xf32>
    %41 = vector.shape_cast %40 : vector<1x1x128xf32> to vector<1x128xf32>
    %42 = vector.shape_cast %41 : vector<1x128xf32> to vector<1x128xf32>
    %43 = vector.broadcast %42 : vector<1x128xf32> to vector<16x128xf32>
    %cst_19 = arith.constant 0.000000e+00 : f32
    %44 = vector.broadcast %cst_19 : f32 to vector<16x32xf32>
    %cst_20 = arith.constant 0.000000e+00 : f32
    %45 = vector.broadcast %cst_20 : f32 to vector<16x32xf32>
    %cst_21 = arith.constant 0.000000e+00 : f32
    %46 = vector.broadcast %cst_21 : f32 to vector<16x32xf32>
    %cst_22 = arith.constant 0.000000e+00 : f32
    %47 = vector.broadcast %cst_22 : f32 to vector<16x32xf32>
    %48 = vector.extract_strided_slice %37 {offsets = [0, 0], sizes = [16, 128], strides = [1, 1]} : vector<64x128xf32> to vector<16x128xf32>
    %49 = arith.truncf %44 : vector<16x32xf32> to vector<16x32xbf16>
    %cst_23 = arith.constant dense<0.000000e+00> : vector<16x128xf32>
    %50 = tpu.matmul %49, %30, %cst_23 {dimension_numbers = #tpu.dot_dimension_numbers<[1], [0], [0], [1], [0, 0, 1, 1], [], []>} : vector<16x32xbf16>, vector<32x128xbf16>, vector<16x128xf32> -> vector<16x128xf32>
    %51 = arith.addf %48, %50 : vector<16x128xf32>
    %52 = vector.extract_strided_slice %51 {offsets = [0, 0], sizes = [16, 32], strides = [1, 1]} : vector<16x128xf32> to vector<16x32xf32>
    %53 = arith.negf %52 : vector<16x32xf32>
    %54 = math.exp %53 : vector<16x32xf32>
    %cst_24 = arith.constant 1.000000e+00 : f32
    %55 = vector.broadcast %cst_24 : f32 to vector<16x32xf32>
    %56 = arith.addf %55, %54 : vector<16x32xf32>
    %57 = arith.divf %55, %56 : vector<16x32xf32>
    %58 = vector.extract_strided_slice %51 {offsets = [0, 32], sizes = [16, 32], strides = [1, 1]} : vector<16x128xf32> to vector<16x32xf32>
    %59 = arith.negf %58 : vector<16x32xf32>
    %60 = math.exp %59 : vector<16x32xf32>
    %cst_25 = arith.constant 1.000000e+00 : f32
    %61 = vector.broadcast %cst_25 : f32 to vector<16x32xf32>
    %62 = arith.addf %61, %60 : vector<16x32xf32>
    %63 = arith.divf %61, %62 : vector<16x32xf32>
    %64 = vector.extract_strided_slice %51 {offsets = [0, 64], sizes = [16, 32], strides = [1, 1]} : vector<16x128xf32> to vector<16x32xf32>
    %65 = math.tanh %64 : vector<16x32xf32>
    %66 = vector.extract_strided_slice %51 {offsets = [0, 96], sizes = [16, 32], strides = [1, 1]} : vector<16x128xf32> to vector<16x32xf32>
    %67 = arith.negf %66 : vector<16x32xf32>
    %68 = math.exp %67 : vector<16x32xf32>
    %cst_26 = arith.constant 1.000000e+00 : f32
    %69 = vector.broadcast %cst_26 : f32 to vector<16x32xf32>
    %70 = arith.addf %69, %68 : vector<16x32xf32>
    %71 = arith.divf %69, %70 : vector<16x32xf32>
    %72 = arith.mulf %63, %46 : vector<16x32xf32>
    %73 = arith.mulf %57, %65 : vector<16x32xf32>
    %74 = arith.addf %72, %73 : vector<16x32xf32>
    %75 = math.tanh %74 : vector<16x32xf32>
    %76 = arith.mulf %71, %75 : vector<16x32xf32>
    %77 = tpu.concatenate %76, %45 in 1 : vector<16x32xf32>, vector<16x32xf32> -> vector<16x64xf32>
    %78 = arith.truncf %77 : vector<16x64xf32> to vector<16x64xbf16>
    %cst_27 = arith.constant dense<0.000000e+00> : vector<16x128xf32>
    %79 = tpu.matmul %78, %39, %cst_27 {dimension_numbers = #tpu.dot_dimension_numbers<[1], [0], [0], [1], [0, 0, 1, 1], [], []>} : vector<16x64xbf16>, vector<64x128xbf16>, vector<16x128xf32> -> vector<16x128xf32>
    %80 = arith.addf %79, %43 : vector<16x128xf32>
    %81 = vector.extract_strided_slice %80 {offsets = [0, 0], sizes = [16, 32], strides = [1, 1]} : vector<16x128xf32> to vector<16x32xf32>
    %82 = arith.negf %81 : vector<16x32xf32>
    %83 = math.exp %82 : vector<16x32xf32>
    %cst_28 = arith.constant 1.000000e+00 : f32
    %84 = vector.broadcast %cst_28 : f32 to vector<16x32xf32>
    %85 = arith.addf %84, %83 : vector<16x32xf32>
    %86 = arith.divf %84, %85 : vector<16x32xf32>
    %87 = vector.extract_strided_slice %80 {offsets = [0, 32], sizes = [16, 32], strides = [1, 1]} : vector<16x128xf32> to vector<16x32xf32>
    %88 = arith.negf %87 : vector<16x32xf32>
    %89 = math.exp %88 : vector<16x32xf32>
    %cst_29 = arith.constant 1.000000e+00 : f32
    %90 = vector.broadcast %cst_29 : f32 to vector<16x32xf32>
    %91 = arith.addf %90, %89 : vector<16x32xf32>
    %92 = arith.divf %90, %91 : vector<16x32xf32>
    %93 = vector.extract_strided_slice %80 {offsets = [0, 64], sizes = [16, 32], strides = [1, 1]} : vector<16x128xf32> to vector<16x32xf32>
    %94 = math.tanh %93 : vector<16x32xf32>
    %95 = vector.extract_strided_slice %80 {offsets = [0, 96], sizes = [16, 32], strides = [1, 1]} : vector<16x128xf32> to vector<16x32xf32>
    %96 = arith.negf %95 : vector<16x32xf32>
    %97 = math.exp %96 : vector<16x32xf32>
    %cst_30 = arith.constant 1.000000e+00 : f32
    %98 = vector.broadcast %cst_30 : f32 to vector<16x32xf32>
    %99 = arith.addf %98, %97 : vector<16x32xf32>
    %100 = arith.divf %98, %99 : vector<16x32xf32>
    %101 = arith.mulf %92, %47 : vector<16x32xf32>
    %102 = arith.mulf %86, %94 : vector<16x32xf32>
    %103 = arith.addf %101, %102 : vector<16x32xf32>
    %104 = math.tanh %103 : vector<16x32xf32>
    %105 = arith.mulf %100, %104 : vector<16x32xf32>
    %106 = vector.extract_strided_slice %37 {offsets = [16, 0], sizes = [16, 128], strides = [1, 1]} : vector<64x128xf32> to vector<16x128xf32>
    %107 = arith.truncf %76 : vector<16x32xf32> to vector<16x32xbf16>
    %cst_31 = arith.constant dense<0.000000e+00> : vector<16x128xf32>
    %108 = tpu.matmul %107, %30, %cst_31 {dimension_numbers = #tpu.dot_dimension_numbers<[1], [0], [0], [1], [0, 0, 1, 1], [], []>} : vector<16x32xbf16>, vector<32x128xbf16>, vector<16x128xf32> -> vector<16x128xf32>
    %109 = arith.addf %106, %108 : vector<16x128xf32>
    %110 = vector.extract_strided_slice %109 {offsets = [0, 0], sizes = [16, 32], strides = [1, 1]} : vector<16x128xf32> to vector<16x32xf32>
    %111 = arith.negf %110 : vector<16x32xf32>
    %112 = math.exp %111 : vector<16x32xf32>
    %cst_32 = arith.constant 1.000000e+00 : f32
    %113 = vector.broadcast %cst_32 : f32 to vector<16x32xf32>
    %114 = arith.addf %113, %112 : vector<16x32xf32>
    %115 = arith.divf %113, %114 : vector<16x32xf32>
    %116 = vector.extract_strided_slice %109 {offsets = [0, 32], sizes = [16, 32], strides = [1, 1]} : vector<16x128xf32> to vector<16x32xf32>
    %117 = arith.negf %116 : vector<16x32xf32>
    %118 = math.exp %117 : vector<16x32xf32>
    %cst_33 = arith.constant 1.000000e+00 : f32
    %119 = vector.broadcast %cst_33 : f32 to vector<16x32xf32>
    %120 = arith.addf %119, %118 : vector<16x32xf32>
    %121 = arith.divf %119, %120 : vector<16x32xf32>
    %122 = vector.extract_strided_slice %109 {offsets = [0, 64], sizes = [16, 32], strides = [1, 1]} : vector<16x128xf32> to vector<16x32xf32>
    %123 = math.tanh %122 : vector<16x32xf32>
    %124 = vector.extract_strided_slice %109 {offsets = [0, 96], sizes = [16, 32], strides = [1, 1]} : vector<16x128xf32> to vector<16x32xf32>
    %125 = arith.negf %124 : vector<16x32xf32>
    %126 = math.exp %125 : vector<16x32xf32>
    %cst_34 = arith.constant 1.000000e+00 : f32
    %127 = vector.broadcast %cst_34 : f32 to vector<16x32xf32>
    %128 = arith.addf %127, %126 : vector<16x32xf32>
    %129 = arith.divf %127, %128 : vector<16x32xf32>
    %130 = arith.mulf %121, %74 : vector<16x32xf32>
    %131 = arith.mulf %115, %123 : vector<16x32xf32>
    %132 = arith.addf %130, %131 : vector<16x32xf32>
    %133 = math.tanh %132 : vector<16x32xf32>
    %134 = arith.mulf %129, %133 : vector<16x32xf32>
    %135 = tpu.concatenate %134, %105 in 1 : vector<16x32xf32>, vector<16x32xf32> -> vector<16x64xf32>
    %136 = arith.truncf %135 : vector<16x64xf32> to vector<16x64xbf16>
    %cst_35 = arith.constant dense<0.000000e+00> : vector<16x128xf32>
    %137 = tpu.matmul %136, %39, %cst_35 {dimension_numbers = #tpu.dot_dimension_numbers<[1], [0], [0], [1], [0, 0, 1, 1], [], []>} : vector<16x64xbf16>, vector<64x128xbf16>, vector<16x128xf32> -> vector<16x128xf32>
    %138 = arith.addf %137, %43 : vector<16x128xf32>
    %139 = vector.extract_strided_slice %138 {offsets = [0, 0], sizes = [16, 32], strides = [1, 1]} : vector<16x128xf32> to vector<16x32xf32>
    %140 = arith.negf %139 : vector<16x32xf32>
    %141 = math.exp %140 : vector<16x32xf32>
    %cst_36 = arith.constant 1.000000e+00 : f32
    %142 = vector.broadcast %cst_36 : f32 to vector<16x32xf32>
    %143 = arith.addf %142, %141 : vector<16x32xf32>
    %144 = arith.divf %142, %143 : vector<16x32xf32>
    %145 = vector.extract_strided_slice %138 {offsets = [0, 32], sizes = [16, 32], strides = [1, 1]} : vector<16x128xf32> to vector<16x32xf32>
    %146 = arith.negf %145 : vector<16x32xf32>
    %147 = math.exp %146 : vector<16x32xf32>
    %cst_37 = arith.constant 1.000000e+00 : f32
    %148 = vector.broadcast %cst_37 : f32 to vector<16x32xf32>
    %149 = arith.addf %148, %147 : vector<16x32xf32>
    %150 = arith.divf %148, %149 : vector<16x32xf32>
    %151 = vector.extract_strided_slice %138 {offsets = [0, 64], sizes = [16, 32], strides = [1, 1]} : vector<16x128xf32> to vector<16x32xf32>
    %152 = math.tanh %151 : vector<16x32xf32>
    %153 = vector.extract_strided_slice %138 {offsets = [0, 96], sizes = [16, 32], strides = [1, 1]} : vector<16x128xf32> to vector<16x32xf32>
    %154 = arith.negf %153 : vector<16x32xf32>
    %155 = math.exp %154 : vector<16x32xf32>
    %cst_38 = arith.constant 1.000000e+00 : f32
    %156 = vector.broadcast %cst_38 : f32 to vector<16x32xf32>
    %157 = arith.addf %156, %155 : vector<16x32xf32>
    %158 = arith.divf %156, %157 : vector<16x32xf32>
    %159 = arith.mulf %150, %103 : vector<16x32xf32>
    %160 = arith.mulf %144, %152 : vector<16x32xf32>
    %161 = arith.addf %159, %160 : vector<16x32xf32>
    %162 = math.tanh %161 : vector<16x32xf32>
    %163 = arith.mulf %158, %162 : vector<16x32xf32>
    %164 = vector.extract_strided_slice %37 {offsets = [32, 0], sizes = [16, 128], strides = [1, 1]} : vector<64x128xf32> to vector<16x128xf32>
    %165 = arith.truncf %134 : vector<16x32xf32> to vector<16x32xbf16>
    %cst_39 = arith.constant dense<0.000000e+00> : vector<16x128xf32>
    %166 = tpu.matmul %165, %30, %cst_39 {dimension_numbers = #tpu.dot_dimension_numbers<[1], [0], [0], [1], [0, 0, 1, 1], [], []>} : vector<16x32xbf16>, vector<32x128xbf16>, vector<16x128xf32> -> vector<16x128xf32>
    %167 = arith.addf %164, %166 : vector<16x128xf32>
    %168 = vector.extract_strided_slice %167 {offsets = [0, 0], sizes = [16, 32], strides = [1, 1]} : vector<16x128xf32> to vector<16x32xf32>
    %169 = arith.negf %168 : vector<16x32xf32>
    %170 = math.exp %169 : vector<16x32xf32>
    %cst_40 = arith.constant 1.000000e+00 : f32
    %171 = vector.broadcast %cst_40 : f32 to vector<16x32xf32>
    %172 = arith.addf %171, %170 : vector<16x32xf32>
    %173 = arith.divf %171, %172 : vector<16x32xf32>
    %174 = vector.extract_strided_slice %167 {offsets = [0, 32], sizes = [16, 32], strides = [1, 1]} : vector<16x128xf32> to vector<16x32xf32>
    %175 = arith.negf %174 : vector<16x32xf32>
    %176 = math.exp %175 : vector<16x32xf32>
    %cst_41 = arith.constant 1.000000e+00 : f32
    %177 = vector.broadcast %cst_41 : f32 to vector<16x32xf32>
    %178 = arith.addf %177, %176 : vector<16x32xf32>
    %179 = arith.divf %177, %178 : vector<16x32xf32>
    %180 = vector.extract_strided_slice %167 {offsets = [0, 64], sizes = [16, 32], strides = [1, 1]} : vector<16x128xf32> to vector<16x32xf32>
    %181 = math.tanh %180 : vector<16x32xf32>
    %182 = vector.extract_strided_slice %167 {offsets = [0, 96], sizes = [16, 32], strides = [1, 1]} : vector<16x128xf32> to vector<16x32xf32>
    %183 = arith.negf %182 : vector<16x32xf32>
    %184 = math.exp %183 : vector<16x32xf32>
    %cst_42 = arith.constant 1.000000e+00 : f32
    %185 = vector.broadcast %cst_42 : f32 to vector<16x32xf32>
    %186 = arith.addf %185, %184 : vector<16x32xf32>
    %187 = arith.divf %185, %186 : vector<16x32xf32>
    %188 = arith.mulf %179, %132 : vector<16x32xf32>
    %189 = arith.mulf %173, %181 : vector<16x32xf32>
    %190 = arith.addf %188, %189 : vector<16x32xf32>
    %191 = math.tanh %190 : vector<16x32xf32>
    %192 = arith.mulf %187, %191 : vector<16x32xf32>
    %193 = tpu.concatenate %192, %163 in 1 : vector<16x32xf32>, vector<16x32xf32> -> vector<16x64xf32>
    %194 = arith.truncf %193 : vector<16x64xf32> to vector<16x64xbf16>
    %cst_43 = arith.constant dense<0.000000e+00> : vector<16x128xf32>
    %195 = tpu.matmul %194, %39, %cst_43 {dimension_numbers = #tpu.dot_dimension_numbers<[1], [0], [0], [1], [0, 0, 1, 1], [], []>} : vector<16x64xbf16>, vector<64x128xbf16>, vector<16x128xf32> -> vector<16x128xf32>
    %196 = arith.addf %195, %43 : vector<16x128xf32>
    %197 = vector.extract_strided_slice %196 {offsets = [0, 0], sizes = [16, 32], strides = [1, 1]} : vector<16x128xf32> to vector<16x32xf32>
    %198 = arith.negf %197 : vector<16x32xf32>
    %199 = math.exp %198 : vector<16x32xf32>
    %cst_44 = arith.constant 1.000000e+00 : f32
    %200 = vector.broadcast %cst_44 : f32 to vector<16x32xf32>
    %201 = arith.addf %200, %199 : vector<16x32xf32>
    %202 = arith.divf %200, %201 : vector<16x32xf32>
    %203 = vector.extract_strided_slice %196 {offsets = [0, 32], sizes = [16, 32], strides = [1, 1]} : vector<16x128xf32> to vector<16x32xf32>
    %204 = arith.negf %203 : vector<16x32xf32>
    %205 = math.exp %204 : vector<16x32xf32>
    %cst_45 = arith.constant 1.000000e+00 : f32
    %206 = vector.broadcast %cst_45 : f32 to vector<16x32xf32>
    %207 = arith.addf %206, %205 : vector<16x32xf32>
    %208 = arith.divf %206, %207 : vector<16x32xf32>
    %209 = vector.extract_strided_slice %196 {offsets = [0, 64], sizes = [16, 32], strides = [1, 1]} : vector<16x128xf32> to vector<16x32xf32>
    %210 = math.tanh %209 : vector<16x32xf32>
    %211 = vector.extract_strided_slice %196 {offsets = [0, 96], sizes = [16, 32], strides = [1, 1]} : vector<16x128xf32> to vector<16x32xf32>
    %212 = arith.negf %211 : vector<16x32xf32>
    %213 = math.exp %212 : vector<16x32xf32>
    %cst_46 = arith.constant 1.000000e+00 : f32
    %214 = vector.broadcast %cst_46 : f32 to vector<16x32xf32>
    %215 = arith.addf %214, %213 : vector<16x32xf32>
    %216 = arith.divf %214, %215 : vector<16x32xf32>
    %217 = arith.mulf %208, %161 : vector<16x32xf32>
    %218 = arith.mulf %202, %210 : vector<16x32xf32>
    %219 = arith.addf %217, %218 : vector<16x32xf32>
    %220 = math.tanh %219 : vector<16x32xf32>
    %221 = arith.mulf %216, %220 : vector<16x32xf32>
    %222 = vector.extract_strided_slice %37 {offsets = [48, 0], sizes = [16, 128], strides = [1, 1]} : vector<64x128xf32> to vector<16x128xf32>
    %223 = arith.truncf %192 : vector<16x32xf32> to vector<16x32xbf16>
    %cst_47 = arith.constant dense<0.000000e+00> : vector<16x128xf32>
    %224 = tpu.matmul %223, %30, %cst_47 {dimension_numbers = #tpu.dot_dimension_numbers<[1], [0], [0], [1], [0, 0, 1, 1], [], []>} : vector<16x32xbf16>, vector<32x128xbf16>, vector<16x128xf32> -> vector<16x128xf32>
    %225 = arith.addf %222, %224 : vector<16x128xf32>
    %226 = vector.extract_strided_slice %225 {offsets = [0, 0], sizes = [16, 32], strides = [1, 1]} : vector<16x128xf32> to vector<16x32xf32>
    %227 = arith.negf %226 : vector<16x32xf32>
    %228 = math.exp %227 : vector<16x32xf32>
    %cst_48 = arith.constant 1.000000e+00 : f32
    %229 = vector.broadcast %cst_48 : f32 to vector<16x32xf32>
    %230 = arith.addf %229, %228 : vector<16x32xf32>
    %231 = arith.divf %229, %230 : vector<16x32xf32>
    %232 = vector.extract_strided_slice %225 {offsets = [0, 32], sizes = [16, 32], strides = [1, 1]} : vector<16x128xf32> to vector<16x32xf32>
    %233 = arith.negf %232 : vector<16x32xf32>
    %234 = math.exp %233 : vector<16x32xf32>
    %cst_49 = arith.constant 1.000000e+00 : f32
    %235 = vector.broadcast %cst_49 : f32 to vector<16x32xf32>
    %236 = arith.addf %235, %234 : vector<16x32xf32>
    %237 = arith.divf %235, %236 : vector<16x32xf32>
    %238 = vector.extract_strided_slice %225 {offsets = [0, 64], sizes = [16, 32], strides = [1, 1]} : vector<16x128xf32> to vector<16x32xf32>
    %239 = math.tanh %238 : vector<16x32xf32>
    %240 = vector.extract_strided_slice %225 {offsets = [0, 96], sizes = [16, 32], strides = [1, 1]} : vector<16x128xf32> to vector<16x32xf32>
    %241 = arith.negf %240 : vector<16x32xf32>
    %242 = math.exp %241 : vector<16x32xf32>
    %cst_50 = arith.constant 1.000000e+00 : f32
    %243 = vector.broadcast %cst_50 : f32 to vector<16x32xf32>
    %244 = arith.addf %243, %242 : vector<16x32xf32>
    %245 = arith.divf %243, %244 : vector<16x32xf32>
    %246 = arith.mulf %237, %190 : vector<16x32xf32>
    %247 = arith.mulf %231, %239 : vector<16x32xf32>
    %248 = arith.addf %246, %247 : vector<16x32xf32>
    %249 = math.tanh %248 : vector<16x32xf32>
    %250 = arith.mulf %245, %249 : vector<16x32xf32>
    %251 = tpu.concatenate %250, %221 in 1 : vector<16x32xf32>, vector<16x32xf32> -> vector<16x64xf32>
    %252 = arith.truncf %251 : vector<16x64xf32> to vector<16x64xbf16>
    %cst_51 = arith.constant dense<0.000000e+00> : vector<16x128xf32>
    %253 = tpu.matmul %252, %39, %cst_51 {dimension_numbers = #tpu.dot_dimension_numbers<[1], [0], [0], [1], [0, 0, 1, 1], [], []>} : vector<16x64xbf16>, vector<64x128xbf16>, vector<16x128xf32> -> vector<16x128xf32>
    %254 = arith.addf %253, %43 : vector<16x128xf32>
    %255 = vector.extract_strided_slice %254 {offsets = [0, 0], sizes = [16, 32], strides = [1, 1]} : vector<16x128xf32> to vector<16x32xf32>
    %256 = arith.negf %255 : vector<16x32xf32>
    %257 = math.exp %256 : vector<16x32xf32>
    %cst_52 = arith.constant 1.000000e+00 : f32
    %258 = vector.broadcast %cst_52 : f32 to vector<16x32xf32>
    %259 = arith.addf %258, %257 : vector<16x32xf32>
    %260 = arith.divf %258, %259 : vector<16x32xf32>
    %261 = vector.extract_strided_slice %254 {offsets = [0, 32], sizes = [16, 32], strides = [1, 1]} : vector<16x128xf32> to vector<16x32xf32>
    %262 = arith.negf %261 : vector<16x32xf32>
    %263 = math.exp %262 : vector<16x32xf32>
    %cst_53 = arith.constant 1.000000e+00 : f32
    %264 = vector.broadcast %cst_53 : f32 to vector<16x32xf32>
    %265 = arith.addf %264, %263 : vector<16x32xf32>
    %266 = arith.divf %264, %265 : vector<16x32xf32>
    %267 = vector.extract_strided_slice %254 {offsets = [0, 64], sizes = [16, 32], strides = [1, 1]} : vector<16x128xf32> to vector<16x32xf32>
    %268 = math.tanh %267 : vector<16x32xf32>
    %269 = vector.extract_strided_slice %254 {offsets = [0, 96], sizes = [16, 32], strides = [1, 1]} : vector<16x128xf32> to vector<16x32xf32>
    %270 = arith.negf %269 : vector<16x32xf32>
    %271 = math.exp %270 : vector<16x32xf32>
    %cst_54 = arith.constant 1.000000e+00 : f32
    %272 = vector.broadcast %cst_54 : f32 to vector<16x32xf32>
    %273 = arith.addf %272, %271 : vector<16x32xf32>
    %274 = arith.divf %272, %273 : vector<16x32xf32>
    %275 = arith.mulf %266, %219 : vector<16x32xf32>
    %276 = arith.mulf %260, %268 : vector<16x32xf32>
    %277 = arith.addf %275, %276 : vector<16x32xf32>
    %278 = math.tanh %277 : vector<16x32xf32>
    %279 = arith.mulf %274, %278 : vector<16x32xf32>
    %c0_55 = arith.constant 0 : index
    %c0_56 = arith.constant 0 : index
    %280 = vector.load %arg6[%c0_55, %c0_56] : memref<16x32xf32, #tpu.memory_space<vmem>>, vector<16x32xf32>
    tpu.vector_store %arg6[%c0_55, %c0_56], %279 {strides = array<i32>} : memref<16x32xf32, #tpu.memory_space<vmem>>, vector<16x32xf32>,
    return
  }
  func.func @transform_0(%arg0: i32) -> (i32, i32) {
    %c0_i32 = arith.constant 0 : i32
    %c0_i32_0 = arith.constant 0 : i32
    return %arg0, %c0_i32 : i32, i32
  }
  func.func @transform_1(%arg0: i32) -> (i32, i32) {
    %c0_i32 = arith.constant 0 : i32
    %c0_i32_0 = arith.constant 0 : i32
    return %arg0, %c0_i32 : i32, i32
  }
  func.func @transform_2(%arg0: i32) -> (i32, i32) {
    %c0_i32 = arith.constant 0 : i32
    %c0_i32_0 = arith.constant 0 : i32
    %c0_i32_1 = arith.constant 0 : i32
    return %c0_i32, %c0_i32_0 : i32, i32
  }
  func.func @transform_3(%arg0: i32) -> (i32, i32, i32) {
    %c0_i32 = arith.constant 0 : i32
    %c0_i32_0 = arith.constant 0 : i32
    %c0_i32_1 = arith.constant 0 : i32
    %c0_i32_2 = arith.constant 0 : i32
    return %c0_i32, %c0_i32_0, %c0_i32_1 : i32, i32, i32
  }
  func.func @transform_4(%arg0: i32) -> (i32, i32, i32) {
    %c0_i32 = arith.constant 0 : i32
    %c0_i32_0 = arith.constant 0 : i32
    %c0_i32_1 = arith.constant 0 : i32
    %c0_i32_2 = arith.constant 0 : i32
    return %c0_i32, %c0_i32_0, %c0_i32_1 : i32, i32, i32
  }
  func.func @transform_5(%arg0: i32) -> (i32, i32) {
    %c0_i32 = arith.constant 0 : i32
    %c0_i32_0 = arith.constant 0 : i32
    return %arg0, %c0_i32 : i32, i32
  }
}

</mosaic_0001>

<bundles_post_ra>
// kernel: tpu_custom_call.1
= control target key start
LH: loop header
LB: loop body
LE: loop exit
PB: predicated region body
PF: predicated region fallthrough
CT: control target
= control target key end

     0   :  { %10 = vsyncpa [#allocation3], 0  ;;  %s1754_s0 = inlined_call_operand.vmem [shape: s32[16,3], index: 0, kind: input, shape index: {}]   ;;  %s1755_s1 = inlined_call_operand.vmem [shape: f32[16,32], index: 1, kind: input, shape index: {}]   ;;  %s1756_s2 = inlined_call_operand.vmem [shape: bf16[64,32], index: 2, kind: input, shape index: {}]   ;;  %s1757_s3 = inlined_call_operand.hbm [shape: bf16[2,64,128], index: 3, kind: input, shape index: {}]   ;;  %s1758_s4 = inlined_call_operand.vmem [shape: f32[2,1,128], index: 4, kind: input, shape index: {}]   ;;  %s1759_s5 = inlined_call_operand.hbm [shape: f32[16,32], index: 5, kind: output, shape index: {}]  }
   0x1   :  { %11 = vsyncpa [#allocation4], 0  ;;  %s22_s20 = sshll.u32 %s1757_s3, 4  ;;  %s1462_s21 = smov [#allocation2]   ;;  %s23_s20 = int_to_ptr.hbm [resolvable:$true] %s22_s20 }
   0x2   :  { %s24_s22 = sshll.u32 %s1462_s21, 4  ;;  %s1463_s23 = smov 64   ;;  %s25_s22 = int_to_ptr.vmem [resolvable:$true] %s24_s22 }
   0x3   :  { %s1464_s24 = smov 4  }
   0x4   :  { %30 = dma.hbm_to_vmem [thread:$0]  %s23_s20, 1024, %s25_s22, [#allocation3], %s1463_s23, %s1463_s23, %s1464_s24  }
   0x5   :  { %1458 = dma.done.wait [#allocation3], 1024  }
   0x6   :  { %1459 = vsyncadd [#allocation3], 4294966272  ;;  %v1465_v0 = vmov 0   ;;  %v1511_v1 = vld [vmem:[%s1754_s0] sm:$0xff]  ;;  %v1220_v2 = vld [vmem:[%s1756_s2 + $0x18] sm:$0xff]  ;;  %v48_v7 = vlaneseq  ;;  %v1466_v11 = vmov 0.0  }
   0x7   :  { %1240 = vset.pattern.permute.xlu0 %v1465_v0  ;;  %95 = vmatpush.bf16.msra.mxu0 %v1220_v2  ;;  %v1520_v3 = vld [vmem:[%s1754_s0 + $0x8] sm:$0xff]  ;;  %v1219_v4 = vld [vmem:[%s1756_s2 + $0x10] sm:$0xff]  ;;  %v1217_v6 = vld [vmem:[%s1756_s2] sm:$0xff]  ;;  %vm87_vm2 = vcmask 523264   ;;  %vm195_vm3 = vcmask 261120   ;;  %v1467_v22 = vmov 1  }
   0x8   :  { %51 = vperm.xlu0 %1240, %v1511_v1   ;;  %125 = vmatpush.bf16.msra.mxu1 %v1220_v2  ;;  %v1218_v5 = vld [vmem:[%s1756_s2 + $0x8] sm:$0xff]  ;;  %v1532_v9 = vand.u32 127, %v48_v7  ;;  %v1539_v15 = vld [vmem:[#allocation2 + $0x18] sm:$0xff]  ;;  %v1221_v17 = vld [vmem:[#allocation2] sm:$0xff]  ;;  %s1468_s11 = smov 32   ;;  %s1119_s20 = sshll.u32 %s1759_s5, 4  ;;  %s1120_s20 = int_to_ptr.hbm [resolvable:$true] %s1119_s20 }
   0x9   :  { %155 = vmatpush.bf16.msra.mxu2 %v1220_v2  ;;  %v1222_v16 = vld [vmem:[#allocation2 + $0x8] sm:$0xff]  ;;  %v1543_v18 = vld [vmem:[#allocation2 + $0x10] sm:$0xff]  ;;  %1241 = vset.pattern.permute.xlu1 %v1467_v22  ;;  %v1552_v23 = vld [vmem:[%s1758_s4] ss:$0 sm:$0xff]  ;;  %s1471_s21 = smov 128   ;;  %s1472_s22 = smov 8  }
   0xa   :  { %214 = vmatpush.bf16.msra.mxu3 %v1222_v16  ;;  %106 = vperm.xlu1 %1241, %v1511_v1  }
   0xb   :  { %96 = vmatpush.bf16.msra.mxu0 %v1219_v4 }
   0xc   :  { %126 = vmatpush.bf16.msra.mxu1 %v1219_v4 }
   0xd   :  { %156 = vmatpush.bf16.msra.mxu2 %v1219_v4 }
   0xe   :  { %215 = vmatpush.bf16.msra.mxu3 %v1221_v17 }
   0xf   :  { %97 = vmatpush.bf16.msra.mxu0 %v1218_v5 }
  0x10   :  { %54 = vperm.xlu0 %1240, %v1520_v3   ;;  %127 = vmatpush.bf16.msra.mxu1 %v1218_v5 }
  0x11   :  { %157 = vmatpush.bf16.msra.mxu2 %v1218_v5 }
  0x12   :  { %109 = vperm.xlu1 %1241, %v1520_v3  }
  0x13   :  { %98 = vmatpush.bf16.msra.mxu0 %v1217_v6 }
  0x14   :  { %128 = vmatpush.bf16.msra.mxu1 %v1217_v6 }
  0x15   :  { %158 = vmatpush.bf16.msra.mxu2 %v1217_v6 }
  0x17   :  { %272 = vmatpush.bf16.msrb.mxu0 %v1539_v15 }
  0x19   :  { %495 = vmatpush.bf16.msrb.mxu2 %v1539_v15 }
  0x1b   :  { %273 = vmatpush.bf16.msrb.mxu0 %v1543_v18 }
  0x1d   :  { %496 = vmatpush.bf16.msrb.mxu2 %v1543_v18 }
  0x7a   :  { %v52_v8 = vpop.permute.xlu0 %51 }
  0x7b   :  { %vm56_vm0 = vcmp.eq.s32.totalorder %v52_v8, %v1532_v9 }
  0x7c   :  { %v1132_v12 = vsel %vm56_vm0, 1.0, %v1466_v11  ;;  %v107_v61 = vpop.permute.xlu1 %106 }
  0x7d   :  { %vm111_vm12 = vcmp.eq.s32.totalorder %v107_v61, %v1532_v9 }
  0x7e   :  { %v1151_v2 = vsel %vm111_vm12, 1.0, %v1466_v11 }
  0x82   :  { %v55_v10 = vpop.permute.xlu0 %54 }
  0x83   :  { %vm57_vm1 = vcmp.eq.s32.totalorder %v55_v10, %v1532_v9 }
  0x84   :  { %v1133_v13 = vsel %vm57_vm1, 1.0, %v1466_v11  ;;  %v110_v4 = vpop.permute.xlu1 %109 }
  0x85   :  { %v62_v14 = vpack.c.bf16 %v1133_v13, %v1132_v12  ;;  %vm112_vm13 = vcmp.eq.s32.totalorder %v110_v4, %v1532_v9 }
  0x86   :  { %v1152_v5 = vsel %vm112_vm13, 1.0, %v1466_v11 }
  0x87   :  { %1150 = vmatmul.msk.bf16.vlgmr.msra.gmra.mxu0 %vm87_vm2, %v62_v14  ;;  %v117_v6 = vpack.c.bf16 %v1152_v5, %v1151_v2 }
  0x89   :  { %1153 = vmatmul.msk.bf16.vlgmr.msra.gmra.mxu1 %vm87_vm2, %v117_v6 }
  0x97   :  { %274 = vmatmul.bf16.vlgmr.msrb.gmra.mxu0 %v1465_v0 }
 0x104   :  { %v100_v19 = vpop.f32.mrf.mxu0 }
 0x10c   :  { %v102_v20 = vpop.f32.mrf.mxu0 }
 0x10d   :  { %v175_v21 = vpack.c.bf16 %v102_v20, %v100_v19  ;;  %v130_v19 = vpop.f32.mrf.mxu1  ;;  %v1469_v20 = vmov 2  }
 0x10e   :  { %1242 = vset.pattern.permute.xlu1 %v1469_v20  ;;  %1243 = vset.pattern.permute.xlu2 %v1469_v20 }
 0x10f   :  { %1165 = vmatmul.msk.bf16.vlgmr.msra.gmra.mxu3 %vm195_vm3, %v175_v21  ;;  %1279 = vset.pattern.permute.xlu0 %v1469_v20 }
 0x114   :  { %v275_v24 = vpop.f32.mrf.mxu0 }
 0x115   :  { %v132_v21 = vpop.f32.mrf.mxu1 }
 0x116   :  { %v176_v22 = vpack.c.bf16 %v132_v21, %v130_v19 }
 0x11c   :  { %v277_v30 = vpop.f32.mrf.mxu0 }
 0x11f   :  { %1166 = vmatmul.msk.bf16.gmra.mxu3 %vm195_vm3, %v176_v22 }
 0x192   :  { %v217_v25 = vpop.f32.mrf.mxu3 }
 0x193   :  { %v218_v26 = vadd.f32 %v1552_v23, %v217_v25 }
 0x195   :  { %v280_v27 = vadd.f32 %v275_v24, %v218_v26 }
 0x197   :  { %1282 = vtanh.f32 %v280_v27  ;;  %v1178_v34 = vmul.f32 -1.442695, %v280_v27 }
 0x19a   :  { %v219_v28 = vpop.f32.mrf.mxu3 }
 0x19b   :  { %v220_v29 = vadd.f32 %v1552_v23, %v219_v28 }
 0x19d   :  { %v1283_v31 = vpop.eup %1282  ;;  %v281_v32 = vadd.f32 %v277_v30, %v220_v29  ;;  %v1228_v30 = vld [vmem:[#allocation2 + $0x38] sm:$0xff] }
 0x19e   :  { %326 = vrot.lane.b32.xlu2 %v1283_v31, %s1463_s23  ;;  %398 = vmatpush.bf16.msrb.mxu1 %v1228_v30  ;;  %v1226_v31 = vld [vmem:[#allocation2 + $0x28] sm:$0xff] }
 0x19f   :  { %1284 = vtanh.f32 %v281_v32  ;;  %v1179_v35 = vmul.f32 -1.442695, %v281_v32  ;;  %605 = vmatpush.bf16.msra.mxu0 %v1228_v30 }
 0x1a0   :  { %1286 = vpow2.f32 %v1178_v34 }
 0x1a1   :  { %1288 = vpow2.f32 %v1179_v35 }
 0x1a5   :  { %v1285_v33 = vpop.eup %1284 }
 0x1a6   :  { %328 = vrot.lane.b32.xlu2 %v1285_v33, %s1463_s23  ;;  %v1287_v36 = vpop.eup %1286 }
 0x1a7   :  { %v288_v37 = vadd.f32 1.0, %v1287_v36  ;;  %v1289_v38 = vpop.eup %1288  ;;  %v1225_v36 = vld [vmem:[#allocation2 + $0x20] sm:$0xff] }
 0x1a8   :  { %v289_v39 = vadd.f32 1.0, %v1289_v38 }
 0x1a9   :  { %1290 = vrcp.f32 %v288_v37  ;;  %v301_v48 = vand.u32 2147483648, %v288_v37  ;;  %vm295_vm5 = vweird.f32 %v288_v37  ;;  %v299_v49 = vand.u32 2147483647, %v288_v37 }
 0x1aa   :  { %1292 = vrcp.f32 %v289_v39  ;;  %v316_v57 = vand.u32 2147483648, %v289_v39  ;;  %vm310_vm9 = vweird.f32 %v289_v39  ;;  %v314_v58 = vand.u32 2147483647, %v289_v39 }
 0x1ab   :  { %v302_v52 = vor.u32 1.1754944e-38, %v301_v48  ;;  %vm300_vm7 = vcmp.eq.f32.partialorder %v299_v49, 8.507059e+37 }
 0x1ac   :  { %v317_v60 = vor.u32 1.1754944e-38, %v316_v57  ;;  %vm315_vm11 = vcmp.eq.f32.partialorder %v314_v58, 8.507059e+37 }
 0x1af   :  { %v1291_v40 = vpop.eup %1290 }
 0x1b0   :  { %v291_v41 = vmul.f32 %v1291_v40, %v288_v37  ;;  %v1293_v43 = vpop.eup %1292  ;;  %vm296_vm4 = vweird.f32 %v1291_v40 }
 0x1b1   :  { %v306_v45 = vmul.f32 %v1293_v43, %v289_v39  ;;  %vm297_vm6 = vmor %vm295_vm5, %vm296_vm4  ;;  %vm311_vm8 = vweird.f32 %v1293_v43 }
 0x1b2   :  { %v292_v42 = vsub.f32 1.0, %v291_v41  ;;  %vm312_vm10 = vmor %vm310_vm9, %vm311_vm8 }
 0x1b3   :  { %v307_v47 = vsub.f32 1.0, %v306_v45 }
 0x1b4   :  { %v293_v44 = vmul.f32 %v1291_v40, %v292_v42 }
 0x1b5   :  { %v308_v51 = vmul.f32 %v1293_v43, %v307_v47 }
 0x1b6   :  { %v294_v46 = vadd.f32 %v1291_v40, %v293_v44  ;;  %v1596_v44 = vld [vmem:[%s1758_s4 + $0x1] ss:$0 sm:$0xff] }
 0x1b7   :  { %v309_v56 = vadd.f32 %v1293_v43, %v308_v51 }
 0x1b8   :  { %v298_v50 = vsel %vm297_vm6, %v1291_v40, %v294_v46 }
 0x1b9   :  { %v303_v54 = vsel %vm300_vm7, %v302_v52, %v298_v50  ;;  %v313_v59 = vsel %vm312_vm10, %v1293_v43, %v309_v56  ;;  %v222_v43 = vpop.f32.mrf.mxu3 }
 0x1ba   :  { %v318_v62 = vsel %vm315_vm11, %v317_v60, %v313_v59  ;;  %v322_v7 = vmul.f32 0.0, %v303_v54  ;;  %v223_v45 = vadd.f32 %v1552_v23, %v222_v43 }
 0x1bb   :  { %v323_v12 = vmul.f32 0.0, %v318_v62 }
 0x1c1   :  { %v224_v50 = vpop.f32.mrf.mxu3 }
 0x1c2   :  { %v225_v51 = vadd.f32 %v1552_v23, %v224_v50 }
 0x1f8   :  { %v327_v53 = vpop.permute.xlu2 %326 }
 0x1f9   :  { %v332_v55 = vmul.f32 %v327_v53, %v303_v54 }
 0x1fb   :  { %336 = vrot.lane.b32.xlu0 %v332_v55, %s1468_s11 }
 0x200   :  { %v329_v63 = vpop.permute.xlu2 %328 }
 0x201   :  { %v333_v0 = vmul.f32 %v329_v63, %v318_v62 }
 0x203   :  { %338 = vrot.lane.b32.xlu1 %v333_v0, %s1468_s11 }
 0x20b   :  { %136 = vperm.xlu1 %1242, %v1511_v1   ;;  %v1227_v1 = vld [vmem:[#allocation2 + $0x30] sm:$0xff] }
 0x20c   :  { %399 = vmatpush.bf16.msrb.mxu1 %v1227_v1  ;;  %606 = vmatpush.bf16.msra.mxu0 %v1227_v1 }
 0x210   :  { %400 = vmatpush.bf16.msrb.mxu1 %v1226_v31  ;;  %607 = vmatpush.bf16.msra.mxu0 %v1226_v31 }
 0x214   :  { %401 = vmatpush.bf16.msrb.mxu1 %v1225_v36  ;;  %608 = vmatpush.bf16.msra.mxu0 %v1225_v36 }
 0x218   :  { %702 = vmatpush.bf16.msra.mxu1 %v1539_v15  ;;  %909 = vmatpush.bf16.msrb.mxu0 %v1539_v15 }
 0x21c   :  { %703 = vmatpush.bf16.msra.mxu1 %v1543_v18  ;;  %910 = vmatpush.bf16.msrb.mxu0 %v1543_v18 }
 0x26d   :  { %v337_v8 = vpop.permute.xlu0 %336 }
 0x26e   :  { %v1566_v10 = vadd.f32 %v337_v8, %v322_v7 }
 0x270   :  { %1294 = vtanh.f32 %v1566_v10 }
 0x275   :  { %v339_v13 = vpop.permute.xlu1 %338 }
 0x276   :  { %v1295_v14 = vpop.eup %1294  ;;  %v1569_v16 = vadd.f32 %v339_v13, %v323_v12 }
 0x277   :  { %348 = vrot.lane.b32.xlu2 %v1295_v14, %s1463_s23 }
 0x278   :  { %1296 = vtanh.f32 %v1569_v16 }
 0x27d   :  { %v137_v32 = vpop.permute.xlu1 %136 }
 0x27e   :  { %v1297_v17 = vpop.eup %1296  ;;  %vm141_vm15 = vcmp.eq.s32.totalorder %v137_v32, %v1532_v9 }
 0x27f   :  { %350 = vrot.lane.b32.xlu0 %v1297_v17, %s1463_s23  ;;  %139 = vperm.xlu2 %1243, %v1520_v3   ;;  %v1154_v34 = vsel %vm141_vm15, 1.0, %v1466_v11 }
 0x2d1   :  { %v349_v24 = vpop.permute.xlu2 %348 }
 0x2d2   :  { %v354_v26 = vmul.f32 %v349_v24, %v303_v54 }
 0x2d9   :  { %v140_v3 = vpop.permute.xlu2 %139 }
 0x2da   :  { %vm142_vm14 = vcmp.eq.s32.totalorder %v140_v3, %v1532_v9 }
 0x2db   :  { %v1155_v33 = vsel %vm142_vm14, 1.0, %v1466_v11 }
 0x2dc   :  { %v147_v35 = vpack.c.bf16 %v1155_v33, %v1154_v34 }
 0x2de   :  { %1156 = vmatmul.msk.bf16.vlgmr.msra.gmra.mxu2 %vm87_vm2, %v147_v35 }
 0x2df   :  { %812 = vmatpush.bf16.msra.mxu2 %v1228_v30 }
 0x2e3   :  { %813 = vmatpush.bf16.msra.mxu2 %v1227_v1 }
 0x2e7   :  { %814 = vmatpush.bf16.msra.mxu2 %v1226_v31 }
 0x2eb   :  { %815 = vmatpush.bf16.msra.mxu2 %v1225_v36 }
 0x2f1   :  { %v351_v25 = vpop.permute.xlu0 %350 }
 0x2f2   :  { %v355_v27 = vmul.f32 %v351_v25, %v318_v62 }
 0x2f4   :  { %v1244_v28 = vpack.i.bf16 %v355_v27, %v354_v26  ;;  %v482_v29 = vpack.c.bf16 %v355_v27, %v354_v26 }
 0x2f6   :  { %1245 = vrot.lane.b32.xlu1 %v1244_v28, %s1468_s11  ;;  %484 = vrot.lane.b32.xlu0 %v482_v29, %s1468_s11 }
 0x361   :  { %v160_v15 = vpop.f32.mrf.mxu2 }
 0x368   :  { %v1246_v9 = vpop.permute.xlu1 %1245  ;;  %v485_v11 = vpop.permute.xlu0 %484 }
 0x369   :  { %v1248_v37 = vunpack.i.h.bf16 %v1246_v9  ;;  %v1247_v38 = vunpack.i.l.bf16 %v1246_v9  ;;  %1199 = vmatmul.msk.bf16.vlgmr.msrb.gmra.mxu2 %vm195_vm3, %v485_v11  ;;  %v162_v42 = vpop.f32.mrf.mxu2 }
 0x36a   :  { %v177_v18 = vpack.c.bf16 %v162_v42, %v160_v15 }
 0x36b   :  { %v365_v39 = vsel %vm195_vm3, %v1248_v37, 0.0  ;;  %v364_v40 = vsel %vm195_vm3, %v1247_v38, 0.0 }
 0x36c   :  { %v366_v41 = vpack.c.bf16 %v365_v39, %v364_v40  ;;  %1167 = vmatmul.msk.bf16.gmra.mxu3 %vm195_vm3, %v177_v18 }
 0x36e   :  { %1196 = vmatmul.msk.bf16.vlgmr.msrb.gmra.mxu1 %vm87_vm2, %v366_v41 }
 0x36f   :  { %1019 = vmatpush.bf16.msrb.mxu1 %v1228_v30 }
 0x373   :  { %1020 = vmatpush.bf16.msrb.mxu1 %v1227_v1 }
 0x377   :  { %1021 = vmatpush.bf16.msrb.mxu1 %v1226_v31 }
 0x37b   :  { %1022 = vmatpush.bf16.msrb.mxu1 %v1225_v36 }
 0x3eb   :  { %v403_v46 = vpop.f32.mrf.mxu1 }
 0x3ec   :  { %v404_v47 = vadd.f32 %v1596_v44, %v403_v46  ;;  %v498_v48 = vpop.f32.mrf.mxu2 }
 0x3ed   :  { %v503_v49 = vadd.f32 %v498_v48, %v223_v45 }
 0x3ee   :  { %1298 = vtanh.f32 %v404_v47  ;;  %v1197_v60 = vmul.f32 -1.442695, %v404_v47 }
 0x3ef   :  { %1300 = vtanh.f32 %v503_v49  ;;  %v1200_v5 = vmul.f32 -1.442695, %v503_v49 }
 0x3f3   :  { %v405_v52 = vpop.f32.mrf.mxu1 }
 0x3f4   :  { %v1299_v53 = vpop.eup %1298  ;;  %v406_v54 = vadd.f32 %v1596_v44, %v405_v52  ;;  %v500_v55 = vpop.f32.mrf.mxu2 }
 0x3f5   :  { %v1301_v56 = vpop.eup %1300  ;;  %v504_v57 = vadd.f32 %v500_v55, %v225_v51  ;;  %452 = vrot.lane.b32.xlu2 %v1299_v53, %s1463_s23 }
 0x3f6   :  { %1302 = vtanh.f32 %v406_v54  ;;  %549 = vrot.lane.b32.xlu1 %v1301_v56, %s1463_s23  ;;  %v1198_v12 = vmul.f32 -1.442695, %v406_v54 }
 0x3f7   :  { %1304 = vtanh.f32 %v504_v57  ;;  %v1201_v61 = vmul.f32 -1.442695, %v504_v57 }
 0x3f8   :  { %1306 = vpow2.f32 %v1197_v60 }
 0x3f9   :  { %1308 = vpow2.f32 %v1201_v61 }
 0x3fc   :  { %v1303_v58 = vpop.eup %1302 }
 0x3fd   :  { %v1305_v59 = vpop.eup %1304  ;;  %454 = vrot.lane.b32.xlu0 %v1303_v58, %s1463_s23 }
 0x3fe   :  { %551 = vrot.lane.b32.xlu2 %v1305_v59, %s1463_s23  ;;  %v1307_v62 = vpop.eup %1306 }
 0x3ff   :  { %v414_v63 = vadd.f32 1.0, %v1307_v62  ;;  %v1309_v0 = vpop.eup %1308 }
 0x400   :  { %v512_v2 = vadd.f32 1.0, %v1309_v0 }
 0x401   :  { %1310 = vrcp.f32 %v414_v63  ;;  %v427_v21 = vand.u32 2147483648, %v414_v63  ;;  %vm421_vm1 = vweird.f32 %v414_v63  ;;  %v425_v24 = vand.u32 2147483647, %v414_v63 }
 0x402   :  { %1312 = vrcp.f32 %v512_v2  ;;  %v539_v33 = vand.u32 2147483648, %v512_v2  ;;  %vm533_vm7 = vweird.f32 %v512_v2  ;;  %v537_v34 = vand.u32 2147483647, %v512_v2 }
 0x403   :  { %1314 = vpow2.f32 %v1200_v5  ;;  %v428_v27 = vor.u32 1.1754944e-38, %v427_v21  ;;  %vm426_vm5 = vcmp.eq.f32.partialorder %v425_v24, 8.507059e+37 }
 0x404   :  { %1316 = vpow2.f32 %v1198_v12  ;;  %v540_v9 = vor.u32 1.1754944e-38, %v539_v33  ;;  %vm538_vm9 = vcmp.eq.f32.partialorder %v537_v34, 8.507059e+37 }
 0x407   :  { %v1311_v4 = vpop.eup %1310 }
 0x408   :  { %v417_v6 = vmul.f32 %v1311_v4, %v414_v63  ;;  %v1313_v8 = vpop.eup %1312  ;;  %vm422_vm0 = vweird.f32 %v1311_v4 }
 0x409   :  { %v1315_v14 = vpop.eup %1314  ;;  %v529_v17 = vmul.f32 %v1313_v8, %v512_v2  ;;  %vm423_vm4 = vmor %vm421_vm1, %vm422_vm0  ;;  %vm534_vm6 = vweird.f32 %v1313_v8 }
 0x40a   :  { %v418_v7 = vsub.f32 1.0, %v417_v6  ;;  %v511_v19 = vadd.f32 1.0, %v1315_v14  ;;  %v1317_v25 = vpop.eup %1316  ;;  %vm535_vm8 = vmor %vm533_vm7, %vm534_vm6 }
 0x40b   :  { %v530_v22 = vsub.f32 1.0, %v529_v17  ;;  %v415_v29 = vadd.f32 1.0, %v1317_v25 }
 0x40c   :  { %v419_v13 = vmul.f32 %v1311_v4, %v418_v7  ;;  %1318 = vrcp.f32 %v511_v19  ;;  %v524_v43 = vand.u32 2147483648, %v511_v19  ;;  %vm518_vm11 = vweird.f32 %v511_v19 }
 0x40d   :  { %v531_v28 = vmul.f32 %v1313_v8, %v530_v22  ;;  %1320 = vrcp.f32 %v415_v29  ;;  %v522_v45 = vand.u32 2147483647, %v511_v19  ;;  %v442_v53 = vand.u32 2147483648, %v415_v29 }
 0x40e   :  { %v420_v20 = vadd.f32 %v1311_v4, %v419_v13  ;;  %v525_v48 = vor.u32 1.1754944e-38, %v524_v43  ;;  %vm436_vm15 = vweird.f32 %v415_v29  ;;  %v440_v54 = vand.u32 2147483647, %v415_v29 }
 0x40f   :  { %v532_v31 = vadd.f32 %v1313_v8, %v531_v28  ;;  %vm523_vm13 = vcmp.eq.f32.partialorder %v522_v45, 8.507059e+37  ;;  %v443_v56 = vor.u32 1.1754944e-38, %v442_v53 }
 0x410   :  { %v424_v26 = vsel %vm423_vm4, %v1311_v4, %v420_v20  ;;  %vm441_vm1 = vcmp.eq.f32.partialorder %v440_v54, 8.507059e+37 }
 0x411   :  { %v1606_v30 = vsel %vm426_vm5, %v428_v27, %v424_v26  ;;  %v536_v35 = vsel %vm535_vm8, %v1313_v8, %v532_v31 }
 0x412   :  { %v1319_v32 = vpop.eup %1318  ;;  %v1610_v11 = vsel %vm538_vm9, %v540_v9, %v536_v35  ;;  %v448_v60 = vmul.f32 0.0, %v1606_v30 }
 0x413   :  { %v514_v36 = vmul.f32 %v1319_v32, %v511_v19  ;;  %v1321_v38 = vpop.eup %1320  ;;  %vm519_vm10 = vweird.f32 %v1319_v32  ;;  %v546_v4 = vmul.f32 %v1610_v11, %v1569_v16 }
 0x414   :  { %v432_v41 = vmul.f32 %v1321_v38, %v415_v29  ;;  %vm520_vm12 = vmor %vm518_vm11, %vm519_vm10  ;;  %vm437_vm14 = vweird.f32 %v1321_v38 }
 0x415   :  { %v515_v40 = vsub.f32 1.0, %v514_v36  ;;  %vm438_vm0 = vmor %vm436_vm15, %vm437_vm14 }
 0x416   :  { %v433_v42 = vsub.f32 1.0, %v432_v41 }
 0x417   :  { %v516_v15 = vmul.f32 %v1319_v32, %v515_v40 }
 0x418   :  { %v434_v46 = vmul.f32 %v1321_v38, %v433_v42 }
 0x419   :  { %v517_v18 = vadd.f32 %v1319_v32, %v516_v15 }
 0x41a   :  { %v435_v51 = vadd.f32 %v1321_v38, %v434_v46 }
 0x41b   :  { %v521_v47 = vsel %vm520_vm12, %v1319_v32, %v517_v18 }
 0x41c   :  { %v526_v50 = vsel %vm523_vm13, %v525_v48, %v521_v47  ;;  %v439_v55 = vsel %vm438_vm0, %v1321_v38, %v435_v51 }
 0x41d   :  { %v444_v57 = vsel %vm441_vm1, %v443_v56, %v439_v55  ;;  %v545_v62 = vmul.f32 %v526_v50, %v1566_v10 }
 0x41e   :  { %v449_v12 = vmul.f32 0.0, %v444_v57 }
 0x44f   :  { %v453_v1 = vpop.permute.xlu2 %452 }
 0x450   :  { %v458_v3 = vmul.f32 %v453_v1, %v1606_v30 }
 0x452   :  { %462 = vrot.lane.b32.xlu0 %v458_v3, %s1468_s11 }
 0x458   :  { %v552_v37 = vpop.permute.xlu2 %551 }
 0x459   :  { %v556_v39 = vmul.f32 %v552_v37, %v1610_v11 }
 0x45b   :  { %561 = vrot.lane.b32.xlu0 %v556_v39, %s1468_s11 }
 0x468   :  { %v550_v49 = vpop.permute.xlu1 %549 }
 0x469   :  { %v555_v52 = vmul.f32 %v550_v49, %v526_v50 }
 0x46b   :  { %559 = vrot.lane.b32.xlu2 %v555_v52, %s1468_s11 }
 0x46f   :  { %v455_v58 = vpop.permute.xlu0 %454 }
 0x470   :  { %v459_v59 = vmul.f32 %v455_v58, %v444_v57 }
 0x472   :  { %464 = vrot.lane.b32.xlu1 %v459_v59, %s1468_s11 }
 0x4c4   :  { %v463_v61 = vpop.permute.xlu0 %462 }
 0x4c5   :  { %v1618_v63 = vadd.f32 %v463_v61, %v448_v60  ;;  %v560_v0 = vpop.permute.xlu2 %559 }
 0x4c6   :  { %v1620_v2 = vadd.f32 %v560_v0, %v545_v62 }
 0x4c7   :  { %1322 = vtanh.f32 %v1618_v63 }
 0x4c8   :  { %1324 = vtanh.f32 %v1620_v2 }
 0x4cd   :  { %v1323_v5 = vpop.eup %1322  ;;  %v562_v6 = vpop.permute.xlu0 %561 }
 0x4ce   :  { %v1325_v7 = vpop.eup %1324  ;;  %v1626_v8 = vadd.f32 %v562_v6, %v546_v4  ;;  %474 = vrot.lane.b32.xlu1 %v1323_v5, %s1463_s23 }
 0x4cf   :  { %571 = vrot.lane.b32.xlu0 %v1325_v7, %s1463_s23 }
 0x4d0   :  { %1326 = vtanh.f32 %v1626_v8 }
 0x4d6   :  { %v1327_v10 = vpop.eup %1326 }
 0x4d7   :  { %573 = vrot.lane.b32.xlu1 %v1327_v10, %s1463_s23 }
 0x4e4   :  { %v465_v13 = vpop.permute.xlu1 %464 }
 0x4e5   :  { %v1632_v14 = vadd.f32 %v465_v13, %v449_v12 }
 0x4e7   :  { %1328 = vtanh.f32 %v1632_v14 }
 0x4ed   :  { %v1329_v16 = vpop.eup %1328 }
 0x4ee   :  { %476 = vrot.lane.b32.xlu2 %v1329_v16, %s1463_s23 }
 0x540   :  { %v475_v17 = vpop.permute.xlu1 %474 }
 0x541   :  { %v572_v19 = vpop.permute.xlu0 %571  ;;  %v480_v21 = vmul.f32 %v475_v17, %v1606_v30 }
 0x542   :  { %v577_v25 = vmul.f32 %v572_v19, %v526_v50 }
 0x548   :  { %v477_v20 = vpop.permute.xlu2 %476 }
 0x549   :  { %v481_v22 = vmul.f32 %v477_v20, %v444_v57  ;;  %v574_v24 = vpop.permute.xlu1 %573 }
 0x54a   :  { %v578_v26 = vmul.f32 %v574_v24, %v1610_v11  ;;  %v227_v11 = vpop.f32.mrf.mxu3 }
 0x54b   :  { %v1254_v27 = vpack.i.bf16 %v481_v22, %v480_v21  ;;  %v228_v37 = vadd.f32 %v1552_v23, %v227_v11 }
 0x54c   :  { %v1249_v28 = vpack.i.bf16 %v578_v26, %v577_v25  ;;  %v689_v29 = vpack.c.bf16 %v578_v26, %v577_v25 }
 0x54d   :  { %1255 = vrot.lane.b32.xlu0 %v1254_v27, %s1463_s23 }
 0x54e   :  { %1250 = vrot.lane.b32.xlu2 %v1249_v28, %s1468_s11  ;;  %691 = vrot.lane.b32.xlu1 %v689_v29, %s1468_s11 }
 0x552   :  { %v229_v41 = vpop.f32.mrf.mxu3 }
 0x553   :  { %v230_v42 = vadd.f32 %v1552_v23, %v229_v41 }
 0x5a8   :  { %v1251_v1 = vpop.permute.xlu2 %1250 }
 0x5a9   :  { %v1253_v31 = vunpack.i.h.bf16 %v1251_v1  ;;  %v1252_v32 = vunpack.i.l.bf16 %v1251_v1 }
 0x5bf   :  { %v1256_v3 = vpop.permute.xlu0 %1255 }
 0x5c0   :  { %v1258_v33 = vunpack.i.h.bf16 %v1256_v3  ;;  %v1257_v30 = vunpack.i.l.bf16 %v1256_v3  ;;  %v692_v34 = vpop.permute.xlu1 %691 }
 0x5c1   :  { %1205 = vmatmul.msk.bf16.vlgmr.msra.gmra.mxu1 %vm195_vm3, %v692_v34 }
 0x5c2   :  { %v595_v35 = vsel %vm195_vm3, %v1252_v32, %v1257_v30  ;;  %v596_v36 = vsel %vm195_vm3, %v1253_v31, %v1258_v33 }
 0x5c3   :  { %v597_v9 = vpack.c.bf16 %v596_v36, %v595_v35 }
 0x5c5   :  { %1202 = vmatmul.msk.bf16.vlgmr.msra.gmra.mxu0 %vm87_vm2, %v597_v9 }
 0x63e   :  { %v705_v38 = vpop.f32.mrf.mxu1 }
 0x63f   :  { %v710_v39 = vadd.f32 %v705_v38, %v228_v37 }
 0x641   :  { %1330 = vtanh.f32 %v710_v39  ;;  %v1206_v56 = vmul.f32 -1.442695, %v710_v39 }
 0x642   :  { %v610_v40 = vpop.f32.mrf.mxu0 }
 0x643   :  { %v611_v15 = vadd.f32 %v1596_v44, %v610_v40 }
 0x645   :  { %1332 = vtanh.f32 %v611_v15  ;;  %v1203_v51 = vmul.f32 -1.442695, %v611_v15 }
 0x646   :  { %v707_v18 = vpop.f32.mrf.mxu1 }
 0x647   :  { %v1331_v43 = vpop.eup %1330  ;;  %v711_v45 = vadd.f32 %v707_v18, %v230_v42 }
 0x648   :  { %756 = vrot.lane.b32.xlu1 %v1331_v43, %s1463_s23 }
 0x649   :  { %1334 = vtanh.f32 %v711_v45  ;;  %v1207_v52 = vmul.f32 -1.442695, %v711_v45 }
 0x64a   :  { %v612_v46 = vpop.f32.mrf.mxu0 }
 0x64b   :  { %v1333_v47 = vpop.eup %1332  ;;  %v613_v48 = vadd.f32 %v1596_v44, %v612_v46 }
 0x64c   :  { %659 = vrot.lane.b32.xlu2 %v1333_v47, %s1463_s23 }
 0x64d   :  { %1336 = vtanh.f32 %v613_v48  ;;  %v1204_v0 = vmul.f32 -1.442695, %v613_v48 }
 0x64e   :  { %1338 = vpow2.f32 %v1203_v51 }
 0x64f   :  { %v1335_v49 = vpop.eup %1334  ;;  %1340 = vpow2.f32 %v1207_v52 }
 0x653   :  { %v1337_v50 = vpop.eup %1336 }
 0x654   :  { %661 = vrot.lane.b32.xlu0 %v1337_v50, %s1463_s23  ;;  %758 = vrot.lane.b32.xlu2 %v1335_v49, %s1463_s23  ;;  %v1339_v53 = vpop.eup %1338 }
 0x655   :  { %v621_v54 = vadd.f32 1.0, %v1339_v53  ;;  %v1341_v55 = vpop.eup %1340 }
 0x656   :  { %v719_v57 = vadd.f32 1.0, %v1341_v55 }
 0x657   :  { %1342 = vrcp.f32 %v621_v54  ;;  %v634_v12 = vand.u32 2147483648, %v621_v54  ;;  %vm628_vm5 = vweird.f32 %v621_v54  ;;  %v632_v13 = vand.u32 2147483647, %v621_v54 }
 0x658   :  { %1344 = vpow2.f32 %v1206_v56  ;;  %v746_v29 = vand.u32 2147483648, %v719_v57  ;;  %vm740_vm9 = vweird.f32 %v719_v57  ;;  %v744_v1 = vand.u32 2147483647, %v719_v57 }
 0x659   :  { %1346 = vrcp.f32 %v719_v57  ;;  %v635_v21 = vor.u32 1.1754944e-38, %v634_v12  ;;  %vm633_vm7 = vcmp.eq.f32.partialorder %v632_v13, 8.507059e+37 }
 0x65a   :  { %1348 = vpow2.f32 %v1204_v0  ;;  %v747_v32 = vor.u32 1.1754944e-38, %v746_v29  ;;  %vm745_vm11 = vcmp.eq.f32.partialorder %v744_v1, 8.507059e+37 }
 0x65d   :  { %v1343_v58 = vpop.eup %1342 }
 0x65e   :  { %v624_v59 = vmul.f32 %v1343_v58, %v621_v54  ;;  %v1345_v60 = vpop.eup %1344  ;;  %vm629_vm4 = vweird.f32 %v1343_v58 }
 0x65f   :  { %v1347_v62 = vpop.eup %1346  ;;  %v718_v4 = vadd.f32 1.0, %v1345_v60  ;;  %vm630_vm6 = vmor %vm628_vm5, %vm629_vm4 }
 0x660   :  { %v625_v61 = vsub.f32 1.0, %v624_v59  ;;  %v736_v6 = vmul.f32 %v1347_v62, %v719_v57  ;;  %v1349_v16 = vpop.eup %1348  ;;  %vm741_vm8 = vweird.f32 %v1347_v62 }
 0x661   :  { %1350 = vrcp.f32 %v718_v4  ;;  %v622_v22 = vadd.f32 1.0, %v1349_v16  ;;  %vm742_vm10 = vmor %vm740_vm9, %vm741_vm8  ;;  %v731_v37 = vand.u32 2147483648, %v718_v4  ;;  %vm725_vm13 = vweird.f32 %v718_v4 }
 0x662   :  { %v626_v5 = vmul.f32 %v1343_v58, %v625_v61  ;;  %v737_v10 = vsub.f32 1.0, %v736_v6  ;;  %v729_v38 = vand.u32 2147483647, %v718_v4 }
 0x663   :  { %1352 = vrcp.f32 %v622_v22  ;;  %v732_v41 = vor.u32 1.1754944e-38, %v731_v37  ;;  %v649_v46 = vand.u32 2147483648, %v622_v22  ;;  %vm643_vm1 = vweird.f32 %v622_v22 }
 0x664   :  { %v627_v7 = vadd.f32 %v1343_v58, %v626_v5  ;;  %v738_v19 = vmul.f32 %v1347_v62, %v737_v10  ;;  %vm730_vm15 = vcmp.eq.f32.partialorder %v729_v38, 8.507059e+37  ;;  %v647_v47 = vand.u32 2147483647, %v622_v22 }
 0x665   :  { %v650_v49 = vor.u32 1.1754944e-38, %v649_v46 }
 0x666   :  { %v631_v17 = vsel %vm630_vm6, %v1343_v58, %v627_v7  ;;  %v739_v27 = vadd.f32 %v1347_v62, %v738_v19  ;;  %vm648_vm5 = vcmp.eq.f32.partialorder %v647_v47, 8.507059e+37 }
 0x667   :  { %v1351_v20 = vpop.eup %1350  ;;  %v1653_v25 = vsel %vm633_vm7, %v635_v21, %v631_v17 }
 0x668   :  { %v721_v28 = vmul.f32 %v1351_v20, %v718_v4  ;;  %v743_v3 = vsel %vm742_vm10, %v1347_v62, %v739_v27  ;;  %vm726_vm12 = vweird.f32 %v1351_v20  ;;  %v655_v56 = vmul.f32 %v1653_v25, %v1618_v63 }
 0x669   :  { %v1657_v33 = vsel %vm745_vm11, %v747_v32, %v743_v3  ;;  %v1353_v36 = vpop.eup %1352  ;;  %vm727_vm14 = vmor %vm725_vm13, %vm726_vm12 }
 0x66a   :  { %v722_v31 = vsub.f32 1.0, %v721_v28  ;;  %v639_v11 = vmul.f32 %v1353_v36, %v622_v22  ;;  %vm644_vm0 = vweird.f32 %v1353_v36  ;;  %v753_v60 = vmul.f32 %v1657_v33, %v1626_v8  ;;  %v165_v22 = vld [vmem:[%s1755_s1] sm:$0xff] }
 0x66b   :  { %vm645_vm4 = vmor %vm643_vm1, %vm644_vm0 }
 0x66c   :  { %v723_v35 = vmul.f32 %v1351_v20, %v722_v31  ;;  %v640_v40 = vsub.f32 1.0, %v639_v11 }
 0x66e   :  { %v724_v9 = vadd.f32 %v1351_v20, %v723_v35  ;;  %v641_v43 = vmul.f32 %v1353_v36, %v640_v40 }
 0x670   :  { %v728_v39 = vsel %vm727_vm14, %v1351_v20, %v724_v9  ;;  %v642_v45 = vadd.f32 %v1353_v36, %v641_v43 }
 0x671   :  { %v733_v42 = vsel %vm730_vm15, %v732_v41, %v728_v39 }
 0x672   :  { %v646_v48 = vsel %vm645_vm4, %v1353_v36, %v642_v45  ;;  %v752_v53 = vmul.f32 %v733_v42, %v1620_v2 }
 0x673   :  { %v651_v51 = vsel %vm648_vm5, %v650_v49, %v646_v48 }
 0x674   :  { %v656_v0 = vmul.f32 %v651_v51, %v1632_v14 }
 0x6a6   :  { %v660_v24 = vpop.permute.xlu2 %659 }
 0x6a7   :  { %v665_v26 = vmul.f32 %v660_v24, %v1653_v25  ;;  %v166_v24 = vld [vmem:[%s1755_s1 + $0x8] sm:$0xff]  ;;  %s1470_s1 = smov [#allocation5]  }
 0x6a8   :  { %s1117_s17 = sshll.u32 %s1470_s1, 4  ;;  %s1118_s17 = int_to_ptr.vmem [resolvable:$true] %s1117_s17 }
 0x6a9   :  { %669 = vrot.lane.b32.xlu0 %v665_v26, %s1468_s11 }
 0x6ae   :  { %v759_v30 = vpop.permute.xlu2 %758 }
 0x6af   :  { %v763_v34 = vmul.f32 %v759_v30, %v1657_v33 }
 0x6b1   :  { %768 = vrot.lane.b32.xlu0 %v763_v34, %s1468_s11 }
 0x6ba   :  { %v757_v15 = vpop.permute.xlu1 %756 }
 0x6bb   :  { %v762_v18 = vmul.f32 %v757_v15, %v733_v42 }
 0x6bd   :  { %766 = vrot.lane.b32.xlu2 %v762_v18, %s1468_s11 }
 0x6c6   :  { %v662_v50 = vpop.permute.xlu0 %661 }
 0x6c7   :  { %v666_v52 = vmul.f32 %v662_v50, %v651_v51 }
 0x6c9   :  { %671 = vrot.lane.b32.xlu1 %v666_v52, %s1468_s11 }
 0x717   :  { %v767_v54 = vpop.permute.xlu2 %766 }
 0x718   :  { %v1664_v55 = vadd.f32 %v767_v54, %v752_v53 }
 0x71a   :  { %1354 = vtanh.f32 %v1664_v55 }
 0x71b   :  { %v670_v57 = vpop.permute.xlu0 %669 }
 0x71c   :  { %v1669_v58 = vadd.f32 %v670_v57, %v655_v56 }
 0x71e   :  { %1356 = vtanh.f32 %v1669_v58 }
 0x720   :  { %v1355_v59 = vpop.eup %1354 }
 0x721   :  { %778 = vrot.lane.b32.xlu0 %v1355_v59, %s1463_s23 }
 0x723   :  { %v769_v2 = vpop.permute.xlu0 %768 }
 0x724   :  { %v1357_v61 = vpop.eup %1356  ;;  %v1675_v62 = vadd.f32 %v769_v2, %v753_v60 }
 0x725   :  { %681 = vrot.lane.b32.xlu1 %v1357_v61, %s1463_s23 }
 0x726   :  { %1358 = vtanh.f32 %v1675_v62 }
 0x72c   :  { %v1359_v63 = vpop.eup %1358 }
 0x72d   :  { %780 = vrot.lane.b32.xlu1 %v1359_v63, %s1463_s23 }
 0x73b   :  { %v672_v4 = vpop.permute.xlu1 %671 }
 0x73c   :  { %v1681_v5 = vadd.f32 %v672_v4, %v656_v0 }
 0x73e   :  { %1360 = vtanh.f32 %v1681_v5 }
 0x744   :  { %v1361_v6 = vpop.eup %1360 }
 0x745   :  { %683 = vrot.lane.b32.xlu2 %v1361_v6, %s1463_s23 }
 0x793   :  { %v779_v7 = vpop.permute.xlu0 %778 }
 0x794   :  { %v784_v13 = vmul.f32 %v779_v7, %v733_v42 }
 0x797   :  { %v682_v8 = vpop.permute.xlu1 %681 }
 0x798   :  { %v687_v16 = vmul.f32 %v682_v8, %v1653_v25  ;;  %v178_v25 = vpack.c.bf16 %v166_v24, %v165_v22 }
 0x79a   :  { %1168 = vmatmul.msk.bf16.gmra.mxu3 %vm195_vm3, %v178_v25 }
 0x79f   :  { %v684_v10 = vpop.permute.xlu2 %683  ;;  %v781_v12 = vpop.permute.xlu1 %780 }
 0x7a0   :  { %v688_v17 = vmul.f32 %v684_v10, %v651_v51  ;;  %v785_v19 = vmul.f32 %v781_v12, %v1657_v33 }
 0x7a2   :  { %v1259_v20 = vpack.i.bf16 %v785_v19, %v784_v13  ;;  %v896_v14 = vpack.c.bf16 %v785_v19, %v784_v13  ;;  %v1264_v21 = vpack.i.bf16 %v688_v17, %v687_v16 }
 0x7a4   :  { %1265 = vrot.lane.b32.xlu0 %v1264_v21, %s1463_s23  ;;  %1260 = vrot.lane.b32.xlu2 %v1259_v20, %s1468_s11 }
 0x7a5   :  { %898 = vrot.lane.b32.xlu1 %v896_v14, %s1468_s11 }
 0x7fe   :  { %v1261_v26 = vpop.permute.xlu2 %1260 }
 0x7ff   :  { %v1263_v28 = vunpack.i.h.bf16 %v1261_v26  ;;  %v1262_v29 = vunpack.i.l.bf16 %v1261_v26 }
 0x816   :  { %v1266_v27 = vpop.permute.xlu0 %1265 }
 0x817   :  { %v1268_v1 = vunpack.i.h.bf16 %v1266_v27  ;;  %v1267_v3 = vunpack.i.l.bf16 %v1266_v27  ;;  %v899_v31 = vpop.permute.xlu1 %898 }
 0x818   :  { %1211 = vmatmul.msk.bf16.vlgmr.msrb.gmra.mxu0 %vm195_vm3, %v899_v31 }
 0x819   :  { %v802_v32 = vsel %vm195_vm3, %v1262_v29, %v1267_v3  ;;  %v803_v33 = vsel %vm195_vm3, %v1263_v28, %v1268_v1 }
 0x81a   :  { %v804_v30 = vpack.c.bf16 %v803_v33, %v802_v32 }
 0x81c   :  { %1208 = vmatmul.msk.bf16.vlgmr.msra.gmra.mxu2 %vm87_vm2, %v804_v30 }
 0x81d   :  { %v232_v34 = vpop.f32.mrf.mxu3 }
 0x81e   :  { %v233_v35 = vadd.f32 %v1552_v23, %v232_v34 }
 0x825   :  { %v234_v39 = vpop.f32.mrf.mxu3 }
 0x826   :  { %v235_v40 = vadd.f32 %v1552_v23, %v234_v39 }
 0x895   :  { %v912_v36 = vpop.f32.mrf.mxu0 }
 0x896   :  { %v917_v9 = vadd.f32 %v912_v36, %v233_v35 }
 0x898   :  { %1362 = vtanh.f32 %v917_v9  ;;  %v1212_v49 = vmul.f32 -1.442695, %v917_v9 }
 0x89d   :  { %v914_v41 = vpop.f32.mrf.mxu0 }
 0x89e   :  { %v1363_v11 = vpop.eup %1362  ;;  %v918_v18 = vadd.f32 %v914_v41, %v235_v40 }
 0x89f   :  { %963 = vrot.lane.b32.xlu1 %v1363_v11, %s1463_s23  ;;  %v817_v37 = vpop.f32.mrf.mxu2 }
 0x8a0   :  { %v818_v38 = vadd.f32 %v1596_v44, %v817_v37  ;;  %v1213_v23 = vmul.f32 -1.442695, %v918_v18 }
 0x8a2   :  { %1364 = vtanh.f32 %v818_v38  ;;  %v1209_v47 = vmul.f32 -1.442695, %v818_v38 }
 0x8a7   :  { %v819_v15 = vpop.f32.mrf.mxu2 }
 0x8a8   :  { %v820_v42 = vadd.f32 %v1596_v44, %v819_v15  ;;  %v1365_v43 = vpop.eup %1364 }
 0x8a9   :  { %866 = vrot.lane.b32.xlu2 %v1365_v43, %s1463_s23 }
 0x8aa   :  { %1366 = vtanh.f32 %v820_v42  ;;  %v1210_v59 = vmul.f32 -1.442695, %v820_v42 }
 0x8ab   :  { %1368 = vtanh.f32 %v918_v18 }
 0x8ac   :  { %1370 = vpow2.f32 %v1209_v47 }
 0x8ad   :  { %1372 = vpow2.f32 %v1213_v23 }
 0x8ae   :  { %1374 = vpow2.f32 %v1212_v49 }
 0x8b0   :  { %v1367_v45 = vpop.eup %1366 }
 0x8b1   :  { %868 = vrot.lane.b32.xlu0 %v1367_v45, %s1463_s23  ;;  %v1369_v46 = vpop.eup %1368 }
 0x8b2   :  { %965 = vrot.lane.b32.xlu2 %v1369_v46, %s1463_s23  ;;  %v1371_v48 = vpop.eup %1370 }
 0x8b3   :  { %v828_v50 = vadd.f32 1.0, %v1371_v48  ;;  %v1373_v51 = vpop.eup %1372 }
 0x8b4   :  { %v1375_v52 = vpop.eup %1374  ;;  %v926_v53 = vadd.f32 1.0, %v1373_v51 }
 0x8b5   :  { %1376 = vrcp.f32 %v828_v50  ;;  %v925_v56 = vadd.f32 1.0, %v1375_v52  ;;  %v841_v10 = vand.u32 2147483648, %v828_v50  ;;  %vm835_vm7 = vweird.f32 %v828_v50 }
 0x8b6   :  { %1378 = vrcp.f32 %v926_v53  ;;  %v839_v12 = vand.u32 2147483647, %v828_v50  ;;  %v953_v26 = vand.u32 2147483648, %v926_v53  ;;  %vm947_vm11 = vweird.f32 %v926_v53 }
 0x8b7   :  { %1380 = vrcp.f32 %v925_v56  ;;  %v842_v20 = vor.u32 1.1754944e-38, %v841_v10  ;;  %v951_v27 = vand.u32 2147483647, %v926_v53  ;;  %v938_v1 = vand.u32 2147483648, %v925_v56 }
 0x8b8   :  { %1382 = vpow2.f32 %v1210_v59  ;;  %vm840_vm9 = vcmp.eq.f32.partialorder %v839_v12, 8.507059e+37  ;;  %v954_v3 = vor.u32 1.1754944e-38, %v953_v26  ;;  %vm932_vm14 = vweird.f32 %v925_v56 }
 0x8b9   :  { %v936_v31 = vand.u32 2147483647, %v925_v56  ;;  %vm952_vm15 = vcmp.eq.f32.partialorder %v951_v27, 8.507059e+37  ;;  %v939_v36 = vor.u32 1.1754944e-38, %v938_v1 }
 0x8bb   :  { %v1377_v54 = vpop.eup %1376  ;;  %vm937_vm1 = vcmp.eq.f32.partialorder %v936_v31, 8.507059e+37 }
 0x8bc   :  { %v831_v57 = vmul.f32 %v1377_v54, %v828_v50  ;;  %v1379_v2 = vpop.eup %1378  ;;  %vm836_vm6 = vweird.f32 %v1377_v54 }
 0x8bd   :  { %v1381_v61 = vpop.eup %1380  ;;  %v943_v0 = vmul.f32 %v1379_v2, %v926_v53  ;;  %vm837_vm8 = vmor %vm835_vm7, %vm836_vm6  ;;  %vm948_vm10 = vweird.f32 %v1379_v2 }
 0x8be   :  { %v832_v60 = vsub.f32 1.0, %v831_v57  ;;  %v928_v4 = vmul.f32 %v1381_v61, %v925_v56  ;;  %v1383_v7 = vpop.eup %1382  ;;  %vm949_vm12 = vmor %vm947_vm11, %vm948_vm10  ;;  %vm933_vm13 = vweird.f32 %v1381_v61 }
 0x8bf   :  { %v944_v8 = vsub.f32 1.0, %v943_v0  ;;  %v829_v16 = vadd.f32 1.0, %v1383_v7  ;;  %vm934_vm0 = vmor %vm932_vm14, %vm933_vm13 }
 0x8c0   :  { %v833_v63 = vmul.f32 %v1377_v54, %v832_v60  ;;  %v929_v13 = vsub.f32 1.0, %v928_v4 }
 0x8c1   :  { %v945_v19 = vmul.f32 %v1379_v2, %v944_v8  ;;  %1384 = vrcp.f32 %v829_v16  ;;  %v856_v15 = vand.u32 2147483648, %v829_v16  ;;  %vm850_vm5 = vweird.f32 %v829_v16 }
 0x8c2   :  { %v834_v6 = vadd.f32 %v1377_v54, %v833_v63  ;;  %v930_v22 = vmul.f32 %v1381_v61, %v929_v13  ;;  %v854_v42 = vand.u32 2147483647, %v829_v16 }
 0x8c3   :  { %v946_v25 = vadd.f32 %v1379_v2, %v945_v19  ;;  %v857_v43 = vor.u32 1.1754944e-38, %v856_v15 }
 0x8c4   :  { %v838_v17 = vsel %vm837_vm8, %v1377_v54, %v834_v6  ;;  %v931_v28 = vadd.f32 %v1381_v61, %v930_v22  ;;  %vm855_vm7 = vcmp.eq.f32.partialorder %v854_v42, 8.507059e+37 }
 0x8c5   :  { %v1709_v21 = vsel %vm840_vm9, %v842_v20, %v838_v17  ;;  %v950_v29 = vsel %vm949_vm12, %v1379_v2, %v946_v25 }
 0x8c6   :  { %v955_v30 = vsel %vm952_vm15, %v954_v3, %v950_v29  ;;  %v935_v34 = vsel %vm934_vm0, %v1381_v61, %v931_v28  ;;  %v862_v51 = vmul.f32 %v1709_v21, %v1669_v58 }
 0x8c7   :  { %v1385_v32 = vpop.eup %1384  ;;  %v940_v37 = vsel %vm937_vm1, %v939_v36, %v935_v34  ;;  %v960_v54 = vmul.f32 %v955_v30, %v1675_v62 }
 0x8c8   :  { %v846_v9 = vmul.f32 %v1385_v32, %v829_v16  ;;  %vm851_vm4 = vweird.f32 %v1385_v32  ;;  %v959_v23 = vmul.f32 %v940_v37, %v1664_v55 }
 0x8c9   :  { %vm852_vm6 = vmor %vm850_vm5, %vm851_vm4 }
 0x8ca   :  { %v847_v39 = vsub.f32 1.0, %v846_v9 }
 0x8cc   :  { %v848_v40 = vmul.f32 %v1385_v32, %v847_v39 }
 0x8ce   :  { %v849_v41 = vadd.f32 %v1385_v32, %v848_v40 }
 0x8d0   :  { %v853_v18 = vsel %vm852_vm6, %v1385_v32, %v849_v41 }
 0x8d1   :  { %v858_v46 = vsel %vm855_vm7, %v857_v43, %v853_v18 }
 0x8d2   :  { %v863_v60 = vmul.f32 %v858_v46, %v1681_v5 }
 0x903   :  { %v867_v14 = vpop.permute.xlu2 %866 }
 0x904   :  { %v872_v24 = vmul.f32 %v867_v14, %v1709_v21 }
 0x906   :  { %876 = vrot.lane.b32.xlu0 %v872_v24, %s1468_s11 }
 0x90c   :  { %v966_v33 = vpop.permute.xlu2 %965 }
 0x90d   :  { %v970_v35 = vmul.f32 %v966_v33, %v955_v30 }
 0x90f   :  { %975 = vrot.lane.b32.xlu0 %v970_v35, %s1468_s11 }
 0x911   :  { %v964_v11 = vpop.permute.xlu1 %963 }
 0x912   :  { %v969_v38 = vmul.f32 %v964_v11, %v940_v37 }
 0x914   :  { %973 = vrot.lane.b32.xlu2 %v969_v38, %s1468_s11 }
 0x923   :  { %v869_v45 = vpop.permute.xlu0 %868 }
 0x924   :  { %v873_v47 = vmul.f32 %v869_v45, %v858_v46 }
 0x926   :  { %878 = vrot.lane.b32.xlu1 %v873_v47, %s1468_s11 }
 0x96e   :  { %v974_v48 = vpop.permute.xlu2 %973 }
 0x96f   :  { %v979_v49 = vadd.f32 %v974_v48, %v959_v23 }
 0x971   :  { %1386 = vtanh.f32 %v979_v49 }
 0x977   :  { %v1387_v50 = vpop.eup %1386 }
 0x978   :  { %985 = vrot.lane.b32.xlu0 %v1387_v50, %s1463_s23  ;;  %v877_v52 = vpop.permute.xlu0 %876 }
 0x979   :  { %v1720_v53 = vadd.f32 %v877_v52, %v862_v51 }
 0x97b   :  { %1388 = vtanh.f32 %v1720_v53 }
 0x981   :  { %v976_v56 = vpop.permute.xlu0 %975  ;;  %v1389_v57 = vpop.eup %1388 }
 0x982   :  { %v980_v59 = vadd.f32 %v976_v56, %v960_v54  ;;  %888 = vrot.lane.b32.xlu1 %v1389_v57, %s1463_s23 }
 0x984   :  { %1390 = vtanh.f32 %v980_v59 }
 0x98a   :  { %v1391_v55 = vpop.eup %1390 }
 0x98b   :  { %987 = vrot.lane.b32.xlu1 %v1391_v55, %s1463_s23 }
 0x998   :  { %v879_v2 = vpop.permute.xlu1 %878 }
 0x999   :  { %v1727_v58 = vadd.f32 %v879_v2, %v863_v60 }
 0x99b   :  { %1392 = vtanh.f32 %v1727_v58 }
 0x9a1   :  { %v1393_v61 = vpop.eup %1392 }
 0x9a2   :  { %890 = vrot.lane.b32.xlu2 %v1393_v61, %s1463_s23 }
 0x9ea   :  { %v986_v0 = vpop.permute.xlu0 %985 }
 0x9eb   :  { %v991_v10 = vmul.f32 %v986_v0, %v940_v37 }
 0x9f4   :  { %v889_v62 = vpop.permute.xlu1 %888 }
 0x9f5   :  { %v894_v4 = vmul.f32 %v889_v62, %v1709_v21 }
 0x9fc   :  { %v891_v63 = vpop.permute.xlu2 %890 }
 0x9fd   :  { %v895_v6 = vmul.f32 %v891_v63, %v858_v46  ;;  %v988_v8 = vpop.permute.xlu1 %987 }
 0x9fe   :  { %v992_v12 = vmul.f32 %v988_v8, %v955_v30 }
 0x9ff   :  { %v1274_v7 = vpack.i.bf16 %v895_v6, %v894_v4 }
 0xa00   :  { %v1269_v5 = vpack.i.bf16 %v992_v12, %v991_v10 }
 0xa01   :  { %1275 = vrot.lane.b32.xlu0 %v1274_v7, %s1463_s23 }
 0xa02   :  { %1270 = vrot.lane.b32.xlu2 %v1269_v5, %s1468_s11 }
 0xa5c   :  { %v1271_v13 = vpop.permute.xlu2 %1270 }
 0xa5d   :  { %v1273_v17 = vunpack.i.h.bf16 %v1271_v13  ;;  %v1272_v19 = vunpack.i.l.bf16 %v1271_v13 }
 0xa73   :  { %v1276_v16 = vpop.permute.xlu0 %1275 }
 0xa74   :  { %v1278_v20 = vunpack.i.h.bf16 %v1276_v16  ;;  %v1277_v14 = vunpack.i.l.bf16 %v1276_v16 }
 0xa76   :  { %v1009_v22 = vsel %vm195_vm3, %v1272_v19, %v1277_v14  ;;  %v1010_v21 = vsel %vm195_vm3, %v1273_v17, %v1278_v20 }
 0xa77   :  { %v1011_v24 = vpack.c.bf16 %v1010_v21, %v1009_v22 }
 0xa79   :  { %1214 = vmatmul.msk.bf16.vlgmr.msrb.gmra.mxu1 %vm87_vm2, %v1011_v24 }
 0xaf6   :  { %v1024_v25 = vpop.f32.mrf.mxu1 }
 0xaf7   :  { %v1025_v26 = vadd.f32 %v1596_v44, %v1024_v25 }
 0xaf9   :  { %1394 = vtanh.f32 %v1025_v26  ;;  %v1215_v33 = vmul.f32 -1.442695, %v1025_v26 }
 0xafe   :  { %v1026_v27 = vpop.f32.mrf.mxu1 }
 0xaff   :  { %v1395_v28 = vpop.eup %1394  ;;  %v1027_v29 = vadd.f32 %v1596_v44, %v1026_v27 }
 0xb00   :  { %1073 = vrot.lane.b32.xlu1 %v1395_v28, %s1463_s23 }
 0xb01   :  { %1396 = vtanh.f32 %v1027_v29  ;;  %v1216_v3 = vmul.f32 -1.442695, %v1027_v29 }
 0xb03   :  { %1398 = vpow2.f32 %v1216_v3 }
 0xb07   :  { %v1397_v1 = vpop.eup %1396 }
 0xb08   :  { %1075 = vrot.lane.b32.xlu2 %v1397_v1, %s1463_s23 }
 0xb09   :  { %v1399_v31 = vpop.eup %1398 }
 0xb0a   :  { %v1036_v32 = vadd.f32 1.0, %v1399_v31 }
 0xb0c   :  { %1400 = vrcp.f32 %v1036_v32  ;;  %v1063_v38 = vand.u32 2147483648, %v1036_v32  ;;  %vm1057_vm8 = vweird.f32 %v1036_v32  ;;  %v1061_v39 = vand.u32 2147483647, %v1036_v32 }
 0xb0d   :  { %1402 = vpow2.f32 %v1215_v33 }
 0xb0e   :  { %v1064_v15 = vor.u32 1.1754944e-38, %v1063_v38  ;;  %vm1062_vm10 = vcmp.eq.f32.partialorder %v1061_v39, 8.507059e+37 }
 0xb12   :  { %v1401_v30 = vpop.eup %1400 }
 0xb13   :  { %v1403_v34 = vpop.eup %1402  ;;  %v1053_v35 = vmul.f32 %v1401_v30, %v1036_v32  ;;  %vm1058_vm2 = vweird.f32 %v1401_v30 }
 0xb14   :  { %v1035_v36 = vadd.f32 1.0, %v1403_v34  ;;  %vm1059_vm9 = vmor %vm1057_vm8, %vm1058_vm2 }
 0xb15   :  { %v1054_v9 = vsub.f32 1.0, %v1053_v35 }
 0xb16   :  { %1404 = vrcp.f32 %v1035_v36  ;;  %v1048_v23 = vand.u32 2147483648, %v1035_v36  ;;  %vm1042_vm12 = vweird.f32 %v1035_v36  ;;  %v1046_v48 = vand.u32 2147483647, %v1035_v36 }
 0xb17   :  { %v1055_v44 = vmul.f32 %v1401_v30, %v1054_v9 }
 0xb18   :  { %v1049_v50 = vor.u32 1.1754944e-38, %v1048_v23  ;;  %vm1047_vm14 = vcmp.eq.f32.partialorder %v1046_v48, 8.507059e+37 }
 0xb19   :  { %v1056_v11 = vadd.f32 %v1401_v30, %v1055_v44 }
 0xb1b   :  { %v1060_v40 = vsel %vm1059_vm9, %v1401_v30, %v1056_v11 }
 0xb1c   :  { %v1405_v37 = vpop.eup %1404  ;;  %v1065_v18 = vsel %vm1062_vm10, %v1064_v15, %v1060_v40 }
 0xb1d   :  { %v1038_v41 = vmul.f32 %v1405_v37, %v1035_v36  ;;  %vm1043_vm11 = vweird.f32 %v1405_v37  ;;  %v1070_v56 = vmul.f32 %v1065_v18, %v1727_v58 }
 0xb1e   :  { %vm1044_vm13 = vmor %vm1042_vm12, %vm1043_vm11 }
 0xb1f   :  { %v1039_v45 = vsub.f32 1.0, %v1038_v41 }
 0xb21   :  { %v1040_v46 = vmul.f32 %v1405_v37, %v1039_v45 }
 0xb23   :  { %v1041_v47 = vadd.f32 %v1405_v37, %v1040_v46 }
 0xb25   :  { %v1045_v49 = vsel %vm1044_vm13, %v1405_v37, %v1041_v47 }
 0xb26   :  { %v1050_v52 = vsel %vm1047_vm14, %v1049_v50, %v1045_v49 }
 0xb27   :  { %v1069_v60 = vmul.f32 %v1050_v52, %v1720_v53 }
 0xb62   :  { %v1076_v42 = vpop.permute.xlu2 %1075 }
 0xb63   :  { %v1080_v43 = vmul.f32 %v1076_v42, %v1065_v18 }
 0xb65   :  { %1085 = vrot.lane.b32.xlu1 %v1080_v43, %s1468_s11 }
 0xb72   :  { %v1074_v51 = vpop.permute.xlu1 %1073 }
 0xb73   :  { %v1079_v54 = vmul.f32 %v1074_v51, %v1050_v52 }
 0xb75   :  { %1083 = vrot.lane.b32.xlu0 %v1079_v54, %s1468_s11 }
 0xbd7   :  { %v1086_v57 = vpop.permute.xlu1 %1085 }
 0xbd8   :  { %v1090_v59 = vadd.f32 %v1086_v57, %v1070_v56 }
 0xbda   :  { %1406 = vtanh.f32 %v1090_v59 }
 0xbe0   :  { %v1407_v55 = vpop.eup %1406 }
 0xbe1   :  { %1097 = vrot.lane.b32.xlu0 %v1407_v55, %s1463_s23 }
 0xbe7   :  { %v1084_v2 = vpop.permute.xlu0 %1083 }
 0xbe8   :  { %v1089_v61 = vadd.f32 %v1084_v2, %v1069_v60 }
 0xbea   :  { %1408 = vtanh.f32 %v1089_v61 }
 0xbf0   :  { %v1409_v62 = vpop.eup %1408 }
 0xbf1   :  { %1095 = vrot.lane.b32.xlu2 %v1409_v62, %s1463_s23 }
 0xc4b   :  { %v1096_v63 = vpop.permute.xlu2 %1095 }
 0xc4c   :  { %v1101_v0 = vmul.f32 %v1096_v63, %v1050_v52 }
 0xc4e   :  { %1105 = vrot.lane.b32.xlu1 %v1101_v0, %s1468_s11 }
 0xc53   :  { %v1098_v4 = vpop.permute.xlu0 %1097 }
 0xc54   :  { %v1102_v58 = vmul.f32 %v1098_v4, %v1065_v18 }
 0xc56   :  { %1107 = vrot.lane.b32.xlu2 %v1102_v58, %s1468_s11 }
 0xcb0   :  { %v1108_v6 = vpop.permute.xlu2 %1107 }
 0xcb1   :  { %1112 = vst.msk [vmem:[#allocation5 + $0x8] sm:$0xff] %vm195_vm3, %v1108_v6 }
 0xcc0   :  { %v1106_v53 = vpop.permute.xlu1 %1105 }
 0xcc1   :  { %1111 = vst.msk [vmem:[#allocation5] sm:$0xff] %vm195_vm3, %v1106_v53 }
 0xcc2   :  { %1125 = dma.vmem_to_hbm [thread:$0]  %s1118_s17, 256, %s1120_s20, [#allocation4], %s1471_s21, %s1471_s21, %s1472_s22  }
 0xcc3   :  { %1460 = dma.done.wait [#allocation4], 256  }
 0xcc4   :  { %1461 = vsyncadd [#allocation4], 4294967040 }
 0xcc5   :  { %1130 = vsyncpa [#allocation3], 1 }
 0xcc6   :  { %1131 = vsyncpa [#allocation4], 1 }

</bundles_post_ra>
